<compile_context>
chip_gen: v7x
topology: tpu7x:2x2x1
jax: 0.10.0
libtpu: 0.0.40
codegen_flags: <defaults>
</compile_context>

<pallas_src>
import math
import functools

import jax
import jax.numpy as jnp
from jax.experimental import pallas as pl
from jax.experimental.pallas import tpu as pltpu


def _encoder_layer_kernel(
    x_ref, mask_ref,
    wqkv_ref, bqkv_ref,
    wo_ref, bo_ref,
    g1_ref, be1_ref,
    w1_ref, b1_ref, w2_ref, b2_ref,
    g2_ref, be2_ref,
    out_ref,
    *, num_heads, head_dim, eps):
  """Grid = (batch,).  One kernel invocation computes the whole encoder layer
  for one batch element."""
  d_model = num_heads * head_dim

  x = x_ref[0]                                   # (S, D) f32 (kept for residual)
  x_bf = x.astype(jnp.bfloat16)                  # cast once per batch element

  # Fused QKV projection: (S, D) @ (D, 3D) -> (S, 3D), f32 accumulation.
  # q columns/bias are pre-scaled by 1/sqrt(head_dim) wrapper-side.
  qkv = jnp.dot(x_bf, wqkv_ref[...],
                preferred_element_type=jnp.float32) + bqkv_ref[...]
  qkv_bf = qkv.astype(jnp.bfloat16)              # single cast of the whole slab

  # Per-head scaled dot-product attention (H is small & static -> unrolled).
  vals = []
  for h in range(num_heads):
    lo = h * head_dim
    q_h = qkv_bf[:, lo:lo + head_dim]                            # (S, hd)
    k_h = qkv_bf[:, d_model + lo:d_model + lo + head_dim]        # (S, hd)
    v_h = qkv_bf[:, 2 * d_model + lo:2 * d_model + lo + head_dim]

    # Scores: contract the last dims (no explicit k transpose), f32 accum.
    s = jax.lax.dot_general(
        q_h, k_h,
        dimension_numbers=(((1,), (1,)), ((), ())),
        preferred_element_type=jnp.float32)                      # (S, S)
    s = s + mask_ref[...]

    # Softmax in f32.
    s = s - jnp.max(s, axis=-1, keepdims=True)
    p = jnp.exp(s)
    p = p * pl.reciprocal(jnp.sum(p, axis=-1, keepdims=True), approx=True)

    vals.append(jnp.dot(p.astype(jnp.bfloat16), v_h,
                        preferred_element_type=jnp.float32))     # (S, hd)

  # Concatenate heads (same order as torch reshape) and do ONE K=D output
  # projection instead of H small-K accumulating matmuls.
  vals_cat = jnp.concatenate(vals, axis=-1).astype(jnp.bfloat16)  # (S, D)
  attn = jnp.dot(vals_cat, wo_ref[...],
                 preferred_element_type=jnp.float32) + bo_ref[...]

  # dropout1: identity (eval mode)
  y = attn + x                                   # residual 1

  mean1 = jnp.mean(y, axis=-1, keepdims=True)
  var1 = jnp.mean((y - mean1) ** 2, axis=-1, keepdims=True)
  y1 = g1_ref[...] * ((y - mean1) * jax.lax.rsqrt(var1 + eps)) + be1_ref[...]

  # Feed-forward (bf16 operands, f32 accumulation).
  h1 = jnp.dot(y1.astype(jnp.bfloat16), w1_ref[...],
               preferred_element_type=jnp.float32) + b1_ref[...]
  h1 = jnp.maximum(h1, 0.0)
  # dropout inside FFN: identity (eval mode)
  h2 = jnp.dot(h1.astype(jnp.bfloat16), w2_ref[...],
               preferred_element_type=jnp.float32) + b2_ref[...]
  # dropout2: identity (eval mode)
  y2 = h2 + y1                                   # residual 2

  mean2 = jnp.mean(y2, axis=-1, keepdims=True)
  var2 = jnp.mean((y2 - mean2) ** 2, axis=-1, keepdims=True)
  out = g2_ref[...] * ((y2 - mean2) * jax.lax.rsqrt(var2 + eps)) + be2_ref[...]
  out_ref[0] = out.astype(out_ref.dtype)


def encoder_layer(x, mask, params, *, num_heads, eps=1e-5):
  """x: (B, S, D) f32; mask: (S, S) f32 additive mask; params: torch-layout weights."""
  B, S, D = x.shape
  hd = D // num_heads
  F = params["w1"].shape[0]
  inv_sqrt = 1.0 / math.sqrt(hd)

  # --- trace-time weight prep: pack QKV as (D, 3D) with head-major columns ---
  # torch qkv_layer rows are grouped (H, [q|k|v], hd); rearrange to columns
  # [q_h0..q_h{H-1} | k_h0.. | v_h0..] so per-head slices are contiguous and
  # the concatenated head values line up with Wo^T for one (S,D)@(D,D) matmul.
  w3 = params["wqkv"].reshape(num_heads, 3, hd, D)
  wq = w3[:, 0].reshape(D, D)
  wk = w3[:, 1].reshape(D, D)
  wv = w3[:, 2].reshape(D, D)
  wqkv_packed = jnp.concatenate(
      [wq.T * inv_sqrt, wk.T, wv.T], axis=1).astype(jnp.bfloat16)   # (D, 3D)

  b3 = params["bqkv"].reshape(num_heads, 3, hd)
  bq = b3[:, 0].reshape(D) * inv_sqrt
  bk = b3[:, 1].reshape(D)
  bv = b3[:, 2].reshape(D)
  bqkv_packed = jnp.concatenate([bq, bk, bv]).reshape(1, 3 * D).astype(jnp.float32)

  wo_t = params["wo"].T.astype(jnp.bfloat16)               # (D, D)
  bo = params["bo"].reshape(1, D).astype(jnp.float32)

  g1 = params["gamma1"].reshape(1, D).astype(jnp.float32)
  be1 = params["beta1"].reshape(1, D).astype(jnp.float32)
  g2 = params["gamma2"].reshape(1, D).astype(jnp.float32)
  be2 = params["beta2"].reshape(1, D).astype(jnp.float32)

  w1t = params["w1"].T.astype(jnp.bfloat16)                # (D, F)
  b1v = params["b1"].reshape(1, F).astype(jnp.float32)
  w2t = params["w2"].T.astype(jnp.bfloat16)                # (F, D)
  b2v = params["b2"].reshape(1, D).astype(jnp.float32)

  kernel = functools.partial(_encoder_layer_kernel,
                             num_heads=num_heads, head_dim=hd, eps=eps)

  x_map = lambda b: (b, 0, 0)
  const2 = lambda b: (0, 0)

  return pl.pallas_call(
      kernel,
      out_shape=jax.ShapeDtypeStruct((B, S, D), x.dtype),
      grid_spec=pltpu.PrefetchScalarGridSpec(
          num_scalar_prefetch=0,
          grid=(B,),
          in_specs=[
              pl.BlockSpec((1, S, D), x_map),          # x
              pl.BlockSpec((S, S), const2),            # additive mask
              pl.BlockSpec((D, 3 * D), const2),        # packed Wqkv (q pre-scaled)
              pl.BlockSpec((1, 3 * D), const2),        # packed bqkv (q pre-scaled)
              pl.BlockSpec((D, D), const2),            # Wo^T
              pl.BlockSpec((1, D), const2),            # bo
              pl.BlockSpec((1, D), const2),            # gamma1
              pl.BlockSpec((1, D), const2),            # beta1
              pl.BlockSpec((D, F), const2),            # W1^T
              pl.BlockSpec((1, F), const2),            # b1
              pl.BlockSpec((F, D), const2),            # W2^T
              pl.BlockSpec((1, D), const2),            # b2
              pl.BlockSpec((1, D), const2),            # gamma2
              pl.BlockSpec((1, D), const2),            # beta2
          ],
          out_specs=pl.BlockSpec((1, S, D), x_map),
      ),
      compiler_params=pltpu.CompilerParams(
          dimension_semantics=("parallel",),
          vmem_limit_bytes=48 * 1024 * 1024,
      ),
  )(x, mask, wqkv_packed, bqkv_packed, wo_t, bo,
    g1, be1, w1t, b1v, w2t, b2v, g2, be2)


def _reference_encoder_layer(x, mask, params, *, num_heads, eps=1e-5):
  """Plain-JAX f32 mirror of the PyTorch EncoderLayer.forward (dropout off)."""
  B, S, D = x.shape
  hd = D // num_heads
  qkv = x @ params["wqkv"].T + params["bqkv"]
  qkv = qkv.reshape(B, S, num_heads, 3 * hd).transpose(0, 2, 1, 3)
  q, k, v = jnp.split(qkv, 3, axis=-1)
  scaled = jnp.einsum("bhqd,bhkd->bhqk", q, k) / math.sqrt(hd) + mask
  attn = jax.nn.softmax(scaled, axis=-1)
  vals = jnp.einsum("bhqk,bhkd->bhqd", attn, v)
  vals = vals.transpose(0, 2, 1, 3).reshape(B, S, D)
  attn_out = vals @ params["wo"].T + params["bo"]

  def ln(z, g, b):
    m = z.mean(-1, keepdims=True)
    var = ((z - m) ** 2).mean(-1, keepdims=True)
    return g * (z - m) / jnp.sqrt(var + eps) + b

  y1 = ln(attn_out + x, params["gamma1"], params["beta1"])
  f = jnp.maximum(y1 @ params["w1"].T + params["b1"], 0.0)
  f = f @ params["w2"].T + params["b2"]
  return ln(f + y1, params["gamma2"], params["beta2"])


if __name__ == "__main__":
  B, S, D, H, F = 2, 16, 64, 4, 128   # batch, seq, d_model, heads, ffn_hidden

  ks = jax.random.split(jax.random.PRNGKey(0), 9)
  x = jax.random.normal(ks[0], (B, S, D), dtype=jnp.float32)
  mask = jnp.where(jnp.tril(jnp.ones((S, S), dtype=bool)), 0.0, -1e9).astype(
      jnp.float32)

  def lin_init(kw, kb, out_f, in_f):
    bound = 1.0 / math.sqrt(in_f)
    w = jax.random.uniform(kw, (out_f, in_f), jnp.float32, -bound, bound)
    b = jax.random.uniform(kb, (out_f,), jnp.float32, -bound, bound)
    return w, b

  wqkv, bqkv = lin_init(ks[1], ks[2], 3 * D, D)
  wo, bo = lin_init(ks[3], ks[4], D, D)
  w1, b1 = lin_init(ks[5], ks[6], F, D)
  w2, b2 = lin_init(ks[7], ks[8], D, F)

  params = dict(
      wqkv=wqkv, bqkv=bqkv, wo=wo, bo=bo,
      w1=w1, b1=b1, w2=w2, b2=b2,
      gamma1=jnp.ones((D,), jnp.float32), beta1=jnp.zeros((D,), jnp.float32),
      gamma2=jnp.ones((D,), jnp.float32), beta2=jnp.zeros((D,), jnp.float32),
  )

  out = encoder_layer(x, mask, params, num_heads=H)
  out = jax.block_until_ready(out)

  ref = _reference_encoder_layer(x, mask, params, num_heads=H)
  assert out.shape == (B, S, D)
  max_err = float(jnp.max(jnp.abs(out - ref)))
  assert jnp.allclose(out, ref, atol=5e-2, rtol=5e-2), (
      f"mismatch vs reference (max abs err {max_err})")

  print("KERNEL_OK")
</pallas_src>

<mosaic_0001>
module attributes {stable_mosaic.version = 11 : i64} {
  func.func @_encoder_layer_kernel(%arg0: i32, %arg1: memref<1x16x64xf32, #tpu.memory_space<vmem>>, %arg2: memref<16x16xf32, #tpu.memory_space<vmem>>, %arg3: memref<64x192xbf16, #tpu.memory_space<vmem>>, %arg4: memref<1x192xf32, #tpu.memory_space<vmem>>, %arg5: memref<64x64xbf16, #tpu.memory_space<vmem>>, %arg6: memref<1x64xf32, #tpu.memory_space<vmem>>, %arg7: memref<1x64xf32, #tpu.memory_space<vmem>>, %arg8: memref<1x64xf32, #tpu.memory_space<vmem>>, %arg9: memref<64x128xbf16, #tpu.memory_space<vmem>>, %arg10: memref<1x128xf32, #tpu.memory_space<vmem>>, %arg11: memref<128x64xbf16, #tpu.memory_space<vmem>>, %arg12: memref<1x64xf32, #tpu.memory_space<vmem>>, %arg13: memref<1x64xf32, #tpu.memory_space<vmem>>, %arg14: memref<1x64xf32, #tpu.memory_space<vmem>>, %arg15: memref<1x16x64xf32, #tpu.memory_space<vmem>>) attributes {dimension_semantics = [#tpu.dimension_semantics<parallel>], iteration_bounds = array<i64: 2>, scalar_prefetch = 0 : i64, scratch_operands = 0 : i64, tpu.core_type = #tpu.core_type<tc>, window_params = [{transform_indices = @transform_0, window_bounds = array<i64: 1, 16, 64>}, {pipeline_mode = #tpu.pipeline_mode<synchronous>, transform_indices = @transform_1, window_bounds = array<i64: 16, 16>}, {pipeline_mode = #tpu.pipeline_mode<synchronous>, transform_indices = @transform_2, window_bounds = array<i64: 64, 192>}, {pipeline_mode = #tpu.pipeline_mode<synchronous>, transform_indices = @transform_3, window_bounds = array<i64: 1, 192>}, {pipeline_mode = #tpu.pipeline_mode<synchronous>, transform_indices = @transform_4, window_bounds = array<i64: 64, 64>}, {pipeline_mode = #tpu.pipeline_mode<synchronous>, transform_indices = @transform_5, window_bounds = array<i64: 1, 64>}, {pipeline_mode = #tpu.pipeline_mode<synchronous>, transform_indices = @transform_6, window_bounds = array<i64: 1, 64>}, {pipeline_mode = #tpu.pipeline_mode<synchronous>, transform_indices = @transform_7, window_bounds = array<i64: 1, 64>}, {pipeline_mode = #tpu.pipeline_mode<synchronous>, transform_indices = @transform_8, window_bounds = array<i64: 64, 128>}, {pipeline_mode = #tpu.pipeline_mode<synchronous>, transform_indices = @transform_9, window_bounds = array<i64: 1, 128>}, {pipeline_mode = #tpu.pipeline_mode<synchronous>, transform_indices = @transform_10, window_bounds = array<i64: 128, 64>}, {pipeline_mode = #tpu.pipeline_mode<synchronous>, transform_indices = @transform_11, window_bounds = array<i64: 1, 64>}, {pipeline_mode = #tpu.pipeline_mode<synchronous>, transform_indices = @transform_12, window_bounds = array<i64: 1, 64>}, {pipeline_mode = #tpu.pipeline_mode<synchronous>, transform_indices = @transform_13, window_bounds = array<i64: 1, 64>}, {transform_indices = @transform_14, window_bounds = array<i64: 1, 16, 64>}]} {
    %c0 = arith.constant 0 : index
    %c0_0 = arith.constant 0 : index
    %c0_1 = arith.constant 0 : index
    %0 = vector.load %arg1[%c0, %c0_0, %c0_1] : memref<1x16x64xf32, #tpu.memory_space<vmem>>, vector<1x16x64xf32>
    %1 = vector.shape_cast %0 : vector<1x16x64xf32> to vector<16x64xf32>
    %2 = arith.truncf %1 : vector<16x64xf32> to vector<16x64xbf16>
    %c0_2 = arith.constant 0 : index
    %c0_3 = arith.constant 0 : index
    %3 = vector.load %arg3[%c0_2, %c0_3] : memref<64x192xbf16, #tpu.memory_space<vmem>>, vector<64x192xbf16>
    %cst = arith.constant dense<0.000000e+00> : vector<16x192xf32>
    %4 = tpu.matmul %2, %3, %cst {dimension_numbers = #tpu.dot_dimension_numbers<[1], [0], [0], [1], [0, 0, 1, 1], [], []>} : vector<16x64xbf16>, vector<64x192xbf16>, vector<16x192xf32> -> vector<16x192xf32>
    %c0_4 = arith.constant 0 : index
    %c0_5 = arith.constant 0 : index
    %5 = vector.load %arg4[%c0_4, %c0_5] : memref<1x192xf32, #tpu.memory_space<vmem>>, vector<1x192xf32>
    %6 = vector.broadcast %5 : vector<1x192xf32> to vector<16x192xf32>
    %7 = arith.addf %4, %6 : vector<16x192xf32>
    %8 = arith.truncf %7 : vector<16x192xf32> to vector<16x192xbf16>
    %9 = vector.extract_strided_slice %8 {offsets = [0, 0], sizes = [16, 16], strides = [1, 1]} : vector<16x192xbf16> to vector<16x16xbf16>
    %10 = vector.extract_strided_slice %8 {offsets = [0, 64], sizes = [16, 16], strides = [1, 1]} : vector<16x192xbf16> to vector<16x16xbf16>
    %11 = vector.extract_strided_slice %8 {offsets = [0, 128], sizes = [16, 16], strides = [1, 1]} : vector<16x192xbf16> to vector<16x16xbf16>
    %cst_6 = arith.constant dense<0.000000e+00> : vector<16x16xf32>
    %12 = tpu.matmul %9, %10, %cst_6 {dimension_numbers = #tpu.dot_dimension_numbers<[1], [1], [0], [0], [0, 0, 1, 0], [], []>} : vector<16x16xbf16>, vector<16x16xbf16>, vector<16x16xf32> -> vector<16x16xf32>
    %c0_7 = arith.constant 0 : index
    %c0_8 = arith.constant 0 : index
    %13 = vector.load %arg2[%c0_7, %c0_8] : memref<16x16xf32, #tpu.memory_space<vmem>>, vector<16x16xf32>
    %14 = arith.addf %12, %13 : vector<16x16xf32>
    %cst_9 = arith.constant dense<0xFF800000> : vector<16xf32>
    %15 = vector.multi_reduction <maximumf>, %14, %cst_9 [1] : vector<16x16xf32> to vector<16xf32>
    %16 = vector.shape_cast %15 : vector<16xf32> to vector<16x1xf32>
    %17 = vector.broadcast %16 : vector<16x1xf32> to vector<16x16xf32>
    %18 = arith.subf %14, %17 : vector<16x16xf32>
    %19 = math.exp %18 : vector<16x16xf32>
    %cst_10 = arith.constant dense<0.000000e+00> : vector<16xf32>
    %20 = vector.multi_reduction <add>, %19, %cst_10 [1] : vector<16x16xf32> to vector<16xf32>
    %21 = vector.shape_cast %20 : vector<16xf32> to vector<16x1xf32>
    %22 = tpu.reciprocal %21 {approx = true} : vector<16x1xf32> -> vector<16x1xf32>
    %23 = vector.broadcast %22 : vector<16x1xf32> to vector<16x16xf32>
    %24 = arith.mulf %19, %23 : vector<16x16xf32>
    %25 = arith.truncf %24 : vector<16x16xf32> to vector<16x16xbf16>
    %cst_11 = arith.constant dense<0.000000e+00> : vector<16x16xf32>
    %26 = tpu.matmul %25, %11, %cst_11 {dimension_numbers = #tpu.dot_dimension_numbers<[1], [0], [0], [1], [0, 0, 1, 1], [], []>} : vector<16x16xbf16>, vector<16x16xbf16>, vector<16x16xf32> -> vector<16x16xf32>
    %27 = vector.extract_strided_slice %8 {offsets = [0, 16], sizes = [16, 16], strides = [1, 1]} : vector<16x192xbf16> to vector<16x16xbf16>
    %28 = vector.extract_strided_slice %8 {offsets = [0, 80], sizes = [16, 16], strides = [1, 1]} : vector<16x192xbf16> to vector<16x16xbf16>
    %29 = vector.extract_strided_slice %8 {offsets = [0, 144], sizes = [16, 16], strides = [1, 1]} : vector<16x192xbf16> to vector<16x16xbf16>
    %cst_12 = arith.constant dense<0.000000e+00> : vector<16x16xf32>
    %30 = tpu.matmul %27, %28, %cst_12 {dimension_numbers = #tpu.dot_dimension_numbers<[1], [1], [0], [0], [0, 0, 1, 0], [], []>} : vector<16x16xbf16>, vector<16x16xbf16>, vector<16x16xf32> -> vector<16x16xf32>
    %c0_13 = arith.constant 0 : index
    %c0_14 = arith.constant 0 : index
    %31 = vector.load %arg2[%c0_13, %c0_14] : memref<16x16xf32, #tpu.memory_space<vmem>>, vector<16x16xf32>
    %32 = arith.addf %30, %31 : vector<16x16xf32>
    %cst_15 = arith.constant dense<0xFF800000> : vector<16xf32>
    %33 = vector.multi_reduction <maximumf>, %32, %cst_15 [1] : vector<16x16xf32> to vector<16xf32>
    %34 = vector.shape_cast %33 : vector<16xf32> to vector<16x1xf32>
    %35 = vector.broadcast %34 : vector<16x1xf32> to vector<16x16xf32>
    %36 = arith.subf %32, %35 : vector<16x16xf32>
    %37 = math.exp %36 : vector<16x16xf32>
    %cst_16 = arith.constant dense<0.000000e+00> : vector<16xf32>
    %38 = vector.multi_reduction <add>, %37, %cst_16 [1] : vector<16x16xf32> to vector<16xf32>
    %39 = vector.shape_cast %38 : vector<16xf32> to vector<16x1xf32>
    %40 = tpu.reciprocal %39 {approx = true} : vector<16x1xf32> -> vector<16x1xf32>
    %41 = vector.broadcast %40 : vector<16x1xf32> to vector<16x16xf32>
    %42 = arith.mulf %37, %41 : vector<16x16xf32>
    %43 = arith.truncf %42 : vector<16x16xf32> to vector<16x16xbf16>
    %cst_17 = arith.constant dense<0.000000e+00> : vector<16x16xf32>
    %44 = tpu.matmul %43, %29, %cst_17 {dimension_numbers = #tpu.dot_dimension_numbers<[1], [0], [0], [1], [0, 0, 1, 1], [], []>} : vector<16x16xbf16>, vector<16x16xbf16>, vector<16x16xf32> -> vector<16x16xf32>
    %45 = vector.extract_strided_slice %8 {offsets = [0, 32], sizes = [16, 16], strides = [1, 1]} : vector<16x192xbf16> to vector<16x16xbf16>
    %46 = vector.extract_strided_slice %8 {offsets = [0, 96], sizes = [16, 16], strides = [1, 1]} : vector<16x192xbf16> to vector<16x16xbf16>
    %47 = vector.extract_strided_slice %8 {offsets = [0, 160], sizes = [16, 16], strides = [1, 1]} : vector<16x192xbf16> to vector<16x16xbf16>
    %cst_18 = arith.constant dense<0.000000e+00> : vector<16x16xf32>
    %48 = tpu.matmul %45, %46, %cst_18 {dimension_numbers = #tpu.dot_dimension_numbers<[1], [1], [0], [0], [0, 0, 1, 0], [], []>} : vector<16x16xbf16>, vector<16x16xbf16>, vector<16x16xf32> -> vector<16x16xf32>
    %c0_19 = arith.constant 0 : index
    %c0_20 = arith.constant 0 : index
    %49 = vector.load %arg2[%c0_19, %c0_20] : memref<16x16xf32, #tpu.memory_space<vmem>>, vector<16x16xf32>
    %50 = arith.addf %48, %49 : vector<16x16xf32>
    %cst_21 = arith.constant dense<0xFF800000> : vector<16xf32>
    %51 = vector.multi_reduction <maximumf>, %50, %cst_21 [1] : vector<16x16xf32> to vector<16xf32>
    %52 = vector.shape_cast %51 : vector<16xf32> to vector<16x1xf32>
    %53 = vector.broadcast %52 : vector<16x1xf32> to vector<16x16xf32>
    %54 = arith.subf %50, %53 : vector<16x16xf32>
    %55 = math.exp %54 : vector<16x16xf32>
    %cst_22 = arith.constant dense<0.000000e+00> : vector<16xf32>
    %56 = vector.multi_reduction <add>, %55, %cst_22 [1] : vector<16x16xf32> to vector<16xf32>
    %57 = vector.shape_cast %56 : vector<16xf32> to vector<16x1xf32>
    %58 = tpu.reciprocal %57 {approx = true} : vector<16x1xf32> -> vector<16x1xf32>
    %59 = vector.broadcast %58 : vector<16x1xf32> to vector<16x16xf32>
    %60 = arith.mulf %55, %59 : vector<16x16xf32>
    %61 = arith.truncf %60 : vector<16x16xf32> to vector<16x16xbf16>
    %cst_23 = arith.constant dense<0.000000e+00> : vector<16x16xf32>
    %62 = tpu.matmul %61, %47, %cst_23 {dimension_numbers = #tpu.dot_dimension_numbers<[1], [0], [0], [1], [0, 0, 1, 1], [], []>} : vector<16x16xbf16>, vector<16x16xbf16>, vector<16x16xf32> -> vector<16x16xf32>
    %63 = vector.extract_strided_slice %8 {offsets = [0, 48], sizes = [16, 16], strides = [1, 1]} : vector<16x192xbf16> to vector<16x16xbf16>
    %64 = vector.extract_strided_slice %8 {offsets = [0, 112], sizes = [16, 16], strides = [1, 1]} : vector<16x192xbf16> to vector<16x16xbf16>
    %65 = vector.extract_strided_slice %8 {offsets = [0, 176], sizes = [16, 16], strides = [1, 1]} : vector<16x192xbf16> to vector<16x16xbf16>
    %cst_24 = arith.constant dense<0.000000e+00> : vector<16x16xf32>
    %66 = tpu.matmul %63, %64, %cst_24 {dimension_numbers = #tpu.dot_dimension_numbers<[1], [1], [0], [0], [0, 0, 1, 0], [], []>} : vector<16x16xbf16>, vector<16x16xbf16>, vector<16x16xf32> -> vector<16x16xf32>
    %c0_25 = arith.constant 0 : index
    %c0_26 = arith.constant 0 : index
    %67 = vector.load %arg2[%c0_25, %c0_26] : memref<16x16xf32, #tpu.memory_space<vmem>>, vector<16x16xf32>
    %68 = arith.addf %66, %67 : vector<16x16xf32>
    %cst_27 = arith.constant dense<0xFF800000> : vector<16xf32>
    %69 = vector.multi_reduction <maximumf>, %68, %cst_27 [1] : vector<16x16xf32> to vector<16xf32>
    %70 = vector.shape_cast %69 : vector<16xf32> to vector<16x1xf32>
    %71 = vector.broadcast %70 : vector<16x1xf32> to vector<16x16xf32>
    %72 = arith.subf %68, %71 : vector<16x16xf32>
    %73 = math.exp %72 : vector<16x16xf32>
    %cst_28 = arith.constant dense<0.000000e+00> : vector<16xf32>
    %74 = vector.multi_reduction <add>, %73, %cst_28 [1] : vector<16x16xf32> to vector<16xf32>
    %75 = vector.shape_cast %74 : vector<16xf32> to vector<16x1xf32>
    %76 = tpu.reciprocal %75 {approx = true} : vector<16x1xf32> -> vector<16x1xf32>
    %77 = vector.broadcast %76 : vector<16x1xf32> to vector<16x16xf32>
    %78 = arith.mulf %73, %77 : vector<16x16xf32>
    %79 = arith.truncf %78 : vector<16x16xf32> to vector<16x16xbf16>
    %cst_29 = arith.constant dense<0.000000e+00> : vector<16x16xf32>
    %80 = tpu.matmul %79, %65, %cst_29 {dimension_numbers = #tpu.dot_dimension_numbers<[1], [0], [0], [1], [0, 0, 1, 1], [], []>} : vector<16x16xbf16>, vector<16x16xbf16>, vector<16x16xf32> -> vector<16x16xf32>
    %81 = tpu.concatenate %26, %44, %62, %80 in 1 : vector<16x16xf32>, vector<16x16xf32>, vector<16x16xf32>, vector<16x16xf32> -> vector<16x64xf32>
    %82 = arith.truncf %81 : vector<16x64xf32> to vector<16x64xbf16>
    %c0_30 = arith.constant 0 : index
    %c0_31 = arith.constant 0 : index
    %83 = vector.load %arg5[%c0_30, %c0_31] : memref<64x64xbf16, #tpu.memory_space<vmem>>, vector<64x64xbf16>
    %cst_32 = arith.constant dense<0.000000e+00> : vector<16x64xf32>
    %84 = tpu.matmul %82, %83, %cst_32 {dimension_numbers = #tpu.dot_dimension_numbers<[1], [0], [0], [1], [0, 0, 1, 1], [], []>} : vector<16x64xbf16>, vector<64x64xbf16>, vector<16x64xf32> -> vector<16x64xf32>
    %c0_33 = arith.constant 0 : index
    %c0_34 = arith.constant 0 : index
    %85 = vector.load %arg6[%c0_33, %c0_34] : memref<1x64xf32, #tpu.memory_space<vmem>>, vector<1x64xf32>
    %86 = vector.broadcast %85 : vector<1x64xf32> to vector<16x64xf32>
    %87 = arith.addf %84, %86 : vector<16x64xf32>
    %88 = arith.addf %87, %1 : vector<16x64xf32>
    %cst_35 = arith.constant dense<0.000000e+00> : vector<16xf32>
    %89 = vector.multi_reduction <add>, %88, %cst_35 [1] : vector<16x64xf32> to vector<16xf32>
    %90 = vector.shape_cast %89 : vector<16xf32> to vector<16x1xf32>
    %cst_36 = arith.constant 6.400000e+01 : f32
    %91 = vector.broadcast %cst_36 : f32 to vector<16x1xf32>
    %92 = arith.divf %90, %91 : vector<16x1xf32>
    %93 = vector.broadcast %92 : vector<16x1xf32> to vector<16x64xf32>
    %94 = arith.subf %88, %93 : vector<16x64xf32>
    %95 = arith.mulf %94, %94 : vector<16x64xf32>
    %cst_37 = arith.constant dense<0.000000e+00> : vector<16xf32>
    %96 = vector.multi_reduction <add>, %95, %cst_37 [1] : vector<16x64xf32> to vector<16xf32>
    %97 = vector.shape_cast %96 : vector<16xf32> to vector<16x1xf32>
    %cst_38 = arith.constant 6.400000e+01 : f32
    %98 = vector.broadcast %cst_38 : f32 to vector<16x1xf32>
    %99 = arith.divf %97, %98 : vector<16x1xf32>
    %c0_39 = arith.constant 0 : index
    %c0_40 = arith.constant 0 : index
    %100 = vector.load %arg7[%c0_39, %c0_40] : memref<1x64xf32, #tpu.memory_space<vmem>>, vector<1x64xf32>
    %101 = vector.broadcast %92 : vector<16x1xf32> to vector<16x64xf32>
    %102 = arith.subf %88, %101 : vector<16x64xf32>
    %cst_41 = arith.constant 9.99999974E-6 : f32
    %103 = vector.broadcast %cst_41 : f32 to vector<16x1xf32>
    %104 = arith.addf %99, %103 : vector<16x1xf32>
    %105 = math.rsqrt %104 : vector<16x1xf32>
    %106 = vector.broadcast %105 : vector<16x1xf32> to vector<16x64xf32>
    %107 = arith.mulf %102, %106 : vector<16x64xf32>
    %108 = vector.broadcast %100 : vector<1x64xf32> to vector<16x64xf32>
    %109 = arith.mulf %108, %107 : vector<16x64xf32>
    %c0_42 = arith.constant 0 : index
    %c0_43 = arith.constant 0 : index
    %110 = vector.load %arg8[%c0_42, %c0_43] : memref<1x64xf32, #tpu.memory_space<vmem>>, vector<1x64xf32>
    %111 = vector.broadcast %110 : vector<1x64xf32> to vector<16x64xf32>
    %112 = arith.addf %109, %111 : vector<16x64xf32>
    %113 = arith.truncf %112 : vector<16x64xf32> to vector<16x64xbf16>
    %c0_44 = arith.constant 0 : index
    %c0_45 = arith.constant 0 : index
    %114 = vector.load %arg9[%c0_44, %c0_45] : memref<64x128xbf16, #tpu.memory_space<vmem>>, vector<64x128xbf16>
    %cst_46 = arith.constant dense<0.000000e+00> : vector<16x128xf32>
    %115 = tpu.matmul %113, %114, %cst_46 {dimension_numbers = #tpu.dot_dimension_numbers<[1], [0], [0], [1], [0, 0, 1, 1], [], []>} : vector<16x64xbf16>, vector<64x128xbf16>, vector<16x128xf32> -> vector<16x128xf32>
    %c0_47 = arith.constant 0 : index
    %c0_48 = arith.constant 0 : index
    %116 = vector.load %arg10[%c0_47, %c0_48] : memref<1x128xf32, #tpu.memory_space<vmem>>, vector<1x128xf32>
    %117 = vector.broadcast %116 : vector<1x128xf32> to vector<16x128xf32>
    %118 = arith.addf %115, %117 : vector<16x128xf32>
    %cst_49 = arith.constant 0.000000e+00 : f32
    %119 = vector.broadcast %cst_49 : f32 to vector<16x128xf32>
    %120 = arith.maximumf %118, %119 : vector<16x128xf32>
    %121 = arith.truncf %120 : vector<16x128xf32> to vector<16x128xbf16>
    %c0_50 = arith.constant 0 : index
    %c0_51 = arith.constant 0 : index
    %122 = vector.load %arg11[%c0_50, %c0_51] : memref<128x64xbf16, #tpu.memory_space<vmem>>, vector<128x64xbf16>
    %cst_52 = arith.constant dense<0.000000e+00> : vector<16x64xf32>
    %123 = tpu.matmul %121, %122, %cst_52 {dimension_numbers = #tpu.dot_dimension_numbers<[1], [0], [0], [1], [0, 0, 1, 1], [], []>} : vector<16x128xbf16>, vector<128x64xbf16>, vector<16x64xf32> -> vector<16x64xf32>
    %c0_53 = arith.constant 0 : index
    %c0_54 = arith.constant 0 : index
    %124 = vector.load %arg12[%c0_53, %c0_54] : memref<1x64xf32, #tpu.memory_space<vmem>>, vector<1x64xf32>
    %125 = vector.broadcast %124 : vector<1x64xf32> to vector<16x64xf32>
    %126 = arith.addf %123, %125 : vector<16x64xf32>
    %127 = arith.addf %126, %112 : vector<16x64xf32>
    %cst_55 = arith.constant dense<0.000000e+00> : vector<16xf32>
    %128 = vector.multi_reduction <add>, %127, %cst_55 [1] : vector<16x64xf32> to vector<16xf32>
    %129 = vector.shape_cast %128 : vector<16xf32> to vector<16x1xf32>
    %cst_56 = arith.constant 6.400000e+01 : f32
    %130 = vector.broadcast %cst_56 : f32 to vector<16x1xf32>
    %131 = arith.divf %129, %130 : vector<16x1xf32>
    %132 = vector.broadcast %131 : vector<16x1xf32> to vector<16x64xf32>
    %133 = arith.subf %127, %132 : vector<16x64xf32>
    %134 = arith.mulf %133, %133 : vector<16x64xf32>
    %cst_57 = arith.constant dense<0.000000e+00> : vector<16xf32>
    %135 = vector.multi_reduction <add>, %134, %cst_57 [1] : vector<16x64xf32> to vector<16xf32>
    %136 = vector.shape_cast %135 : vector<16xf32> to vector<16x1xf32>
    %cst_58 = arith.constant 6.400000e+01 : f32
    %137 = vector.broadcast %cst_58 : f32 to vector<16x1xf32>
    %138 = arith.divf %136, %137 : vector<16x1xf32>
    %c0_59 = arith.constant 0 : index
    %c0_60 = arith.constant 0 : index
    %139 = vector.load %arg13[%c0_59, %c0_60] : memref<1x64xf32, #tpu.memory_space<vmem>>, vector<1x64xf32>
    %140 = vector.broadcast %131 : vector<16x1xf32> to vector<16x64xf32>
    %141 = arith.subf %127, %140 : vector<16x64xf32>
    %cst_61 = arith.constant 9.99999974E-6 : f32
    %142 = vector.broadcast %cst_61 : f32 to vector<16x1xf32>
    %143 = arith.addf %138, %142 : vector<16x1xf32>
    %144 = math.rsqrt %143 : vector<16x1xf32>
    %145 = vector.broadcast %144 : vector<16x1xf32> to vector<16x64xf32>
    %146 = arith.mulf %141, %145 : vector<16x64xf32>
    %147 = vector.broadcast %139 : vector<1x64xf32> to vector<16x64xf32>
    %148 = arith.mulf %147, %146 : vector<16x64xf32>
    %c0_62 = arith.constant 0 : index
    %c0_63 = arith.constant 0 : index
    %149 = vector.load %arg14[%c0_62, %c0_63] : memref<1x64xf32, #tpu.memory_space<vmem>>, vector<1x64xf32>
    %150 = vector.broadcast %149 : vector<1x64xf32> to vector<16x64xf32>
    %151 = arith.addf %148, %150 : vector<16x64xf32>
    %c0_64 = arith.constant 0 : index
    %c0_65 = arith.constant 0 : index
    %c0_66 = arith.constant 0 : index
    %152 = vector.load %arg15[%c0_64, %c0_65, %c0_66] : memref<1x16x64xf32, #tpu.memory_space<vmem>>, vector<1x16x64xf32>
    %153 = vector.shape_cast %152 : vector<1x16x64xf32> to vector<16x64xf32>
    %154 = vector.shape_cast %151 : vector<16x64xf32> to vector<1x16x64xf32>
    tpu.vector_store %arg15[%c0_64, %c0_65, %c0_66], %154 {strides = array<i32>} : memref<1x16x64xf32, #tpu.memory_space<vmem>>, vector<1x16x64xf32>,
    return
  }
  func.func @transform_0(%arg0: i32) -> (i32, i32, i32) {
    %c0_i32 = arith.constant 0 : i32
    %c0_i32_0 = arith.constant 0 : i32
    %c0_i32_1 = arith.constant 0 : i32
    return %arg0, %c0_i32, %c0_i32_0 : i32, i32, i32
  }
  func.func @transform_1(%arg0: i32) -> (i32, i32) {
    %c0_i32 = arith.constant 0 : i32
    %c0_i32_0 = arith.constant 0 : i32
    %c0_i32_1 = arith.constant 0 : i32
    return %c0_i32, %c0_i32_0 : i32, i32
  }
  func.func @transform_2(%arg0: i32) -> (i32, i32) {
    %c0_i32 = arith.constant 0 : i32
    %c0_i32_0 = arith.constant 0 : i32
    %c0_i32_1 = arith.constant 0 : i32
    return %c0_i32, %c0_i32_0 : i32, i32
  }
  func.func @transform_3(%arg0: i32) -> (i32, i32) {
    %c0_i32 = arith.constant 0 : i32
    %c0_i32_0 = arith.constant 0 : i32
    %c0_i32_1 = arith.constant 0 : i32
    return %c0_i32, %c0_i32_0 : i32, i32
  }
  func.func @transform_4(%arg0: i32) -> (i32, i32) {
    %c0_i32 = arith.constant 0 : i32
    %c0_i32_0 = arith.constant 0 : i32
    %c0_i32_1 = arith.constant 0 : i32
    return %c0_i32, %c0_i32_0 : i32, i32
  }
  func.func @transform_5(%arg0: i32) -> (i32, i32) {
    %c0_i32 = arith.constant 0 : i32
    %c0_i32_0 = arith.constant 0 : i32
    %c0_i32_1 = arith.constant 0 : i32
    return %c0_i32, %c0_i32_0 : i32, i32
  }
  func.func @transform_6(%arg0: i32) -> (i32, i32) {
    %c0_i32 = arith.constant 0 : i32
    %c0_i32_0 = arith.constant 0 : i32
    %c0_i32_1 = arith.constant 0 : i32
    return %c0_i32, %c0_i32_0 : i32, i32
  }
  func.func @transform_7(%arg0: i32) -> (i32, i32) {
    %c0_i32 = arith.constant 0 : i32
    %c0_i32_0 = arith.constant 0 : i32
    %c0_i32_1 = arith.constant 0 : i32
    return %c0_i32, %c0_i32_0 : i32, i32
  }
  func.func @transform_8(%arg0: i32) -> (i32, i32) {
    %c0_i32 = arith.constant 0 : i32
    %c0_i32_0 = arith.constant 0 : i32
    %c0_i32_1 = arith.constant 0 : i32
    return %c0_i32, %c0_i32_0 : i32, i32
  }
  func.func @transform_9(%arg0: i32) -> (i32, i32) {
    %c0_i32 = arith.constant 0 : i32
    %c0_i32_0 = arith.constant 0 : i32
    %c0_i32_1 = arith.constant 0 : i32
    return %c0_i32, %c0_i32_0 : i32, i32
  }
  func.func @transform_10(%arg0: i32) -> (i32, i32) {
    %c0_i32 = arith.constant 0 : i32
    %c0_i32_0 = arith.constant 0 : i32
    %c0_i32_1 = arith.constant 0 : i32
    return %c0_i32, %c0_i32_0 : i32, i32
  }
  func.func @transform_11(%arg0: i32) -> (i32, i32) {
    %c0_i32 = arith.constant 0 : i32
    %c0_i32_0 = arith.constant 0 : i32
    %c0_i32_1 = arith.constant 0 : i32
    return %c0_i32, %c0_i32_0 : i32, i32
  }
  func.func @transform_12(%arg0: i32) -> (i32, i32) {
    %c0_i32 = arith.constant 0 : i32
    %c0_i32_0 = arith.constant 0 : i32
    %c0_i32_1 = arith.constant 0 : i32
    return %c0_i32, %c0_i32_0 : i32, i32
  }
  func.func @transform_13(%arg0: i32) -> (i32, i32) {
    %c0_i32 = arith.constant 0 : i32
    %c0_i32_0 = arith.constant 0 : i32
    %c0_i32_1 = arith.constant 0 : i32
    return %c0_i32, %c0_i32_0 : i32, i32
  }
  func.func @transform_14(%arg0: i32) -> (i32, i32, i32) {
    %c0_i32 = arith.constant 0 : i32
    %c0_i32_0 = arith.constant 0 : i32
    %c0_i32_1 = arith.constant 0 : i32
    return %arg0, %c0_i32, %c0_i32_0 : i32, i32, i32
  }
}

</mosaic_0001>

<bundles_post_ra>
// kernel: tpu_custom_call.1
= control target key start
LH: loop header
LB: loop body
LE: loop exit
PB: predicated region body
PF: predicated region fallthrough
CT: control target
= control target key end

     0   :  { %s2714_s0 = inlined_call_operand.vmem [shape: f32[2,16,64], index: 0, kind: input, shape index: {}]   ;;  %s2715_s1 = inlined_call_operand.hbm [shape: f32[16,16], index: 1, kind: input, shape index: {}]   ;;  %s2716_s2 = inlined_call_operand.vmem [shape: bf16[64,192], index: 2, kind: input, shape index: {}]   ;;  %s2717_s3 = inlined_call_operand.vmem [shape: f32[1,192], index: 3, kind: input, shape index: {}]   ;;  %s2718_s4 = inlined_call_operand.hbm [shape: bf16[64,64], index: 4, kind: input, shape index: {}]   ;;  %s2719_s5 = inlined_call_operand.vmem [shape: f32[1,64], index: 5, kind: input, shape index: {}]   ;;  %s2720_s6 = inlined_call_operand.vmem [shape: f32[1,64], index: 6, kind: input, shape index: {}]   ;;  %s2721_s7 = inlined_call_operand.vmem [shape: f32[1,64], index: 7, kind: input, shape index: {}]   ;;  %s2722_s8 = inlined_call_operand.hbm [shape: bf16[64,128], index: 8, kind: input, shape index: {}]   ;;  %s2723_s9 = inlined_call_operand.hbm [shape: f32[1,128], index: 9, kind: input, shape index: {}]   ;;  %s2724_s10 = inlined_call_operand.vmem [shape: bf16[128,64], index: 10, kind: input, shape index: {}]   ;;  %s2725_s11 = inlined_call_operand.vmem [shape: f32[1,64], index: 11, kind: input, shape index: {}]   ;;  %s2726_s12 = inlined_call_operand.vmem [shape: f32[1,64], index: 12, kind: input, shape index: {}]   ;;  %s2727_s13 = inlined_call_operand.vmem [shape: f32[1,64], index: 13, kind: input, shape index: {}]   ;;  %s2728_s14 = inlined_call_operand.hbm [shape: f32[2,16,64], index: 14, kind: output, shape index: {}]  }
   0x1   :  { %2743 = sst [smem:[#allocation22_spill]] %s2718_s4 }
   0x2   :  { %2744 = sst [smem:[#allocation23_spill]] %s2727_s13 }
   0x3   :  { %2745 = sst [smem:[#allocation24_spill]] %s2728_s14 }
   0x4   :  { %19 = vsyncpa [#allocation3], 0 }
   0x5   :  { %20 = vsyncpa [#allocation6], 0 }
   0x6   :  { %21 = vsyncpa [#allocation9], 0 }
   0x7   :  { %22 = vsyncpa [#allocation4], 0 }
   0x8   :  { %24 = vsyncpa [#allocation4 + $0x1], 0  ;;  %s2301_s29 = smov 0   ;;  %s2303_s30 = smov 0  }
   0x9   :  { %s2305_s15 = smov 0   ;;  %s2307_s16 = smov 0  }
   0xa LB: > { %2746 = sst [smem:[#allocation15_spill]] %s2191_s29  ;;  %s2322_s17 = sadd.s32 4294967295, %s2203_s16   ;;  %s2203_s16 = sphi %s2307_s16, %s2776_s16   ;;  %s2199_s15 = sphi %s2305_s15, %s2778_s15   ;;  %s2195_s30 = sphi %s2303_s30, %s2780_s30   ;;  %s2191_s29 = sphi %s2301_s29, %s2779_s29  }
   0xb   : > { %2747 = sst [smem:[#allocation16_spill]] %s2199_s15  ;;  %s1647_s18 = sadd.s32 4294967294, %s2203_s16  }
   0xc   : > { %2748 = sst [smem:[#allocation17_spill]] %s2203_s16  ;;  %s2326_s19 = sadd.s32 1, %s2203_s16  }
   0xd   : > { %2749 = sst [smem:[#allocation18_spill]] %s2326_s19  ;;  %s336_s20 = sadd.s32 1, %s2199_s15 }
   0xe   : > { %s333_s21 = ssub.s32 %s2203_s16, %s2326_s19  ;;  %p346_p0 = scmp.ne.s32.totalorder %s2199_s15, %s2195_s30 }
   0xf   : > { %p334_p1 = scmp.eq.s32.totalorder %s333_s21, 0  ;;  %p347_p2 = scmp.eq.s32.totalorder %s2322_s17, 1 }
  0x10   : > { %p352_p3 = scmp.ne.s32.totalorder %s2195_s30, %s2191_s29  ;;  %p353_p4 = scmp.eq.s32.totalorder %s1647_s18, 1 }
  0x11   : > { %s2337_s22 = scalar_select %p334_p1, %s2199_s15, %s336_s20  }
  0x12   : > { %p2339_p5 = por %p347_p2, %p346_p0  ;;  %p2343_p6 = por %p353_p4, %p352_p3 }
  0x13   : > { %2750 = sst [smem:[#allocation19_spill]] %s2337_s22  ;;  %p1648_p7 = scmp.ge.s32.totalorder %s2203_s16, 1 }
  0x14   : > { %s2751_s23 = scalar_select %p2339_p5, 1, 0 }
  0x15   : > { %s2753_s24 = scalar_select %p2343_p6, 1, 0 }
  0x16   : > { %2752 = sst [smem:[#allocation20_spill]] %s2751_s23  ;;  %p360_p8 = scmp.lt.s32.totalorder %s2203_s16, 3 }
  0x17   : > { %2754 = sst [smem:[#allocation21_spill]] %s2753_s24  ;;  %p2734_p9 = scmp.eq.s32.totalorder %s2322_s17, 0 }
  0x18   : > { %p2350_p10 = pnand %p1648_p7, %p360_p8  ;;  %s2205_s26 = smov [#allocation5]  }
  0x19   : > { %s391_s27 = sshll.u32 %s2205_s26, 4  ;;  %s2206_s18 = smov [#allocation2]   ;;  %s392_s27 = int_to_ptr.vmem [resolvable:$true] %s391_s27 }
  0x1a   : > { %s2755_s25 = scalar_select %p2350_p10, 1, 0 }
  0x1b   : > { %p1856_p11 = pneg %p2350_p10  ;;  %s372_s20 = sshll.u32 %s2206_s18, 4  ;;  %s2362_s20 = int_to_ptr.vmem [resolvable:$true] %s372_s20 }
  0x1c   : > { %s2757_s4 = sld [smem:[#allocation22_spill]] }
  0x1d   : > { %p2358_p12 = pnand %p2734_p9, %p1856_p11 }
  0x1f   : > { %p2372_p0 = pneg %p2358_p12 }
  0x22   : > { %s2017_s15 = scalar_lea.hbm %s2757_s4, 512 }
  0x23   : > { %p2018_p13 = scmp.ne.s32.totalorder %s2757_s4, %s2017_s15  ;;  %p2024_p3 = scmp.lt.u32.totalorder %s2017_s15, %s2757_s4 }
  0x25   : > { %p2020_p1 = pnand %p2372_p0, %p2018_p13 }
  0x27   : > { %p2021_p2 = pneg %p2020_p1 }
  0x29   : > { %p2026_p4 = pnand %p2024_p3, %p2021_p2 }
  0x2b   : > { %2029 = shalt.err (!%p2026_p4)
}
  0x2c   : > { %s2030_s22 = scalar_lea.vmem %s392_s27, 512  ;;  %p2038_p9 = scmp.lt.s32.totalorder %s392_s27, %s392_s27 }
  0x2d   : > { %p2031_p7 = scmp.ne.s32.totalorder %s392_s27, %s2030_s22  ;;  %p2039_p6 = scmp.lt.s32.totalorder %s2030_s22, %s2030_s22 }
  0x2f   : > { %p2033_p8 = pnand %p2031_p7, %p2372_p0  ;;  %p2040_p5 = por %p2039_p6, %p2038_p9 }
  0x31   : > { %p2034_p11 = pneg %p2033_p8 }
  0x33   : > { %p2041_p10 = pnand %p2040_p5, %p2034_p11 }
  0x35   : > { %2044 = shalt.err (!%p2041_p10)
}
  0x36   : > { %s2741_s19 = smov 64   ;;  %s2742_s24 = smov 4  }
  0x37   : > { %1862 = dma.hbm_to_vmem [thread:$0]  (!%p2358_p12), %s2757_s4, 512, %s392_s27, [#allocation6], %s2741_s19, %s2741_s19, %s2742_s24  }
  0x38   : > { %s2045_s16 = scalar_lea.hbm %s2715_s1, 256 }
  0x39   : > { %p2046_p5 = scmp.ne.s32.totalorder %s2715_s1, %s2045_s16  ;;  %p2052_p10 = scmp.lt.u32.totalorder %s2045_s16, %s2715_s1 }
  0x3b   : > { %p2048_p6 = pnand %p2046_p5, %p2372_p0 }
  0x3d   : > { %p2049_p9 = pneg %p2048_p6 }
  0x3f   : > { %p2054_p13 = pnand %p2052_p10, %p2049_p9 }
  0x41   : > { %2057 = shalt.err (!%p2054_p13)
}
  0x42   : > { %s2058_s27 = scalar_lea.vmem %s2362_s20, 256  ;;  %p2066_p4 = scmp.lt.s32.totalorder %s2362_s20, %s2362_s20 }
  0x43   : > { %p2059_p1 = scmp.ne.s32.totalorder %s2362_s20, %s2058_s27  ;;  %p2067_p7 = scmp.lt.s32.totalorder %s2058_s27, %s2058_s27 }
  0x45   : > { %p2061_p2 = pnand %p2059_p1, %p2372_p0  ;;  %p2068_p8 = por %p2067_p7, %p2066_p4 }
  0x47   : > { %p2062_p3 = pneg %p2061_p2 }
  0x49   : > { %p2069_p11 = pnand %p2068_p8, %p2062_p3 }
  0x4b   : > { %2072 = shalt.err (!%p2069_p11)
}
  0x4c   : > { %s2209_s14 = smov 128   ;;  %s2210_s13 = smov 8  }
  0x4d   : > { %1859 = dma.hbm_to_vmem [thread:$0]  (!%p2358_p12), %s2715_s1, 256, %s2362_s20, [#allocation3], %s2209_s14, %s2209_s14, %s2210_s13  }
  0x4e   : > { %s2211_s29 = smov [#allocation7]   ;;  %s2212_s21 = smov [#allocation8]  }
  0x4f   : > { %s413_s15 = sshll.u32 %s2211_s29, 4  ;;  %s427_s18 = sshll.u32 %s2212_s21, 4  ;;  %s414_s15 = int_to_ptr.vmem [resolvable:$true] %s413_s15  ;;  %s2414_s18 = int_to_ptr.vmem [resolvable:$true] %s427_s18 }
  0x50   : > { %s2073_s19 = scalar_lea.hbm %s2722_s8, 512 }
  0x51   : > { %p2074_p5 = scmp.ne.s32.totalorder %s2722_s8, %s2073_s19  ;;  %p2080_p10 = scmp.lt.u32.totalorder %s2073_s19, %s2722_s8 }
  0x53   : > { %p2076_p6 = pnand %p2074_p5, %p2372_p0 }
  0x55   : > { %p2077_p9 = pneg %p2076_p6 }
  0x57   : > { %p2082_p13 = pnand %p2080_p10, %p2077_p9 }
  0x59   : > { %2085 = shalt.err (!%p2082_p13)
}
  0x5a   : > { %s2086_s14 = scalar_lea.vmem %s414_s15, 512  ;;  %p2094_p4 = scmp.lt.s32.totalorder %s414_s15, %s414_s15 }
  0x5b   : > { %p2087_p1 = scmp.ne.s32.totalorder %s414_s15, %s2086_s14  ;;  %p2095_p7 = scmp.lt.s32.totalorder %s2086_s14, %s2086_s14 }
  0x5d   : > { %p2089_p2 = pnand %p2087_p1, %p2372_p0  ;;  %p2096_p8 = por %p2095_p7, %p2094_p4 }
  0x5f   : > { %p2090_p3 = pneg %p2089_p2 }
  0x61   : > { %p2097_p11 = pnand %p2096_p8, %p2090_p3 }
  0x63   : > { %2100 = shalt.err (!%p2097_p11)
}
  0x64   : > { %s2759_s4 = smov 4   ;;  %s2760_s24 = smov 64  }
  0x65   : > { %1865 = dma.hbm_to_vmem [thread:$0]  (!%p2358_p12), %s2722_s8, 512, %s414_s15, [#allocation6], %s2760_s24, %s2760_s24, %s2759_s4  }
  0x66   : > { %s2101_s21 = scalar_lea.hbm %s2723_s9, 16 }
  0x67   : > { %p2102_p5 = scmp.ne.s32.totalorder %s2723_s9, %s2101_s21  ;;  %p2108_p10 = scmp.lt.u32.totalorder %s2101_s21, %s2723_s9 }
  0x69   : > { %p2104_p6 = pnand %p2102_p5, %p2372_p0 }
  0x6b   : > { %p2105_p9 = pneg %p2104_p6 }
  0x6d   : > { %p2110_p13 = pnand %p2108_p10, %p2105_p9 }
  0x6f   : > { %2113 = shalt.err (!%p2110_p13)
}
  0x70   : > { %s2114_s15 = scalar_lea.vmem %s2414_s18, 16  ;;  %s2121_s14 = scalar_lea.vmem %s2414_s18, 32 }
  0x71   : > { %p2115_p1 = scmp.ne.s32.totalorder %s2414_s18, %s2114_s15  ;;  %p2122_p4 = scmp.lt.s32.totalorder %s2414_s18, %s2414_s18 }
  0x72   : > { %p2123_p7 = scmp.lt.s32.totalorder %s2121_s14, %s2114_s15 }
  0x73   : > { %p2117_p2 = pnand %p2115_p1, %p2372_p0 }
  0x74   : > { %p2124_p8 = por %p2123_p7, %p2122_p4 }
  0x75   : > { %p2118_p3 = pneg %p2117_p2 }
  0x77   : > { %p2125_p11 = pnand %p2124_p8, %p2118_p3 }
  0x79   : > { %2128 = shalt.err (!%p2125_p11)
}
  0x7a   : > { %1868 = dma.hbm_to_vmem [thread:$0]  (!%p2358_p12), %s2723_s9, 16, %s2414_s18, [#allocation9]  }
  0x7b   : > { %p2761_p5 = scmp.ne.s32.totalorder %s2755_s25, 0 }
  0x7c   : > { %p2762_p0 = scmp.eq.s32.totalorder (!%p2761_p5), %s2322_s17, 0 }
  0x7d   : > { %460 = sbr.rel (%p2761_p5) target bundleno = 2729 (0xaa9), region = 76 }
  0x84   : > { %2174 = dma.done.wait (%p2762_p0), [#allocation3], 256   ;;  %p2763_p6 = pmov %p2762_p0 }
  0x85   : > { %p2764_p9 = pmov %p2762_p0 }
  0x86   : > { %2176 = vsyncadd (%p2763_p6), [#allocation3], 4294967040 }
  0x87   : > { %2178 = dma.done.wait (%p2764_p9), [#allocation6], 1024   ;;  %p2765_p10 = pmov %p2762_p0 }
  0x88   : > { %p2766_p13 = pmov %p2762_p0 }
  0x89   : > { %2180 = vsyncadd (%p2765_p10), [#allocation6], 4294966272 }
  0x8a   : > { %2182 = dma.done.wait (%p2766_p13), [#allocation9], 16   ;;  %p2767_p12 = pmov %p2762_p0 }
  0x8b   : > { %v2213_v0 = vmov 0   ;;  %p518_p1 = scmp.lt.s32.totalorder %s2322_s17, 1  ;;  %v1949_v1 = vld [vmem:[%s2716_s2 + $0x4] ss:$8 sps:$4 sm:$0xff]   ;;  %v1951_v2 = vld [vmem:[%s2716_s2] ss:$8 sps:$4 sm:$0xff]   ;;  %v537_v12 = vlaneseq }
  0x8c   : > { %2184 = vsyncadd (%p2767_p12), [#allocation9], 4294967280  ;;  %623 = vmatprep.mubr.bf16.mxu1 %v2213_v0  ;;  %591 = vmatprep.subr.bf16.mxu1 %v1949_v1  ;;  %v1952_v3 = vld [vmem:[%s2716_s2 + $0x14] ss:$8 sps:$4 sm:$0xff]   ;;  %v1954_v4 = vld [vmem:[%s2716_s2 + $0x10] ss:$8 sps:$4 sm:$0xff]  }
  0x8d   : > { %s519_s25 = scalar_select %p518_p1, %s2322_s17, 1  ;;  %592 = vmatpush1.bf16.msra.mxu1 %v1951_v2  ;;  %v1955_v5 = vld [vmem:[%s2716_s2 + $0x24] ss:$8 sps:$4 sm:$0xff]   ;;  %v1957_v6 = vld [vmem:[%s2716_s2 + $0x20] ss:$8 sps:$4 sm:$0xff]   ;;  %vm587_vm0 = vcmask 523264  }
  0x8e   : > { %593 = vmatprep.subr.bf16.mxu1 %v1952_v3  ;;  %v1958_v7 = vld [vmem:[%s2716_s2 + $0x34] ss:$8 sps:$4 sm:$0xff]   ;;  %v1960_v8 = vld [vmem:[%s2716_s2 + $0x30] ss:$8 sps:$4 sm:$0xff]   ;;  %v538_v13 = vshrl.u32 %v537_v12, 7  ;;  %v2214_v14 = vmov 0.0  }
  0x8f   : > { %s1709_s22 = sshll.u32 %s519_s25, 4  ;;  %1758 = vmatprep.subr.bf16.mxu0 %v2214_v14  ;;  %v535_v16 = vld [vmem:[%s2717_s3] sm:$0x3]  ;;  %vm2215_vm1 = vmmov 0   ;;  %s2216_s23 = smov 112   ;;  %vm641_vm2 = vcmask 130048  }
  0x90   : > { %s522_s26 = scalar_lea.vmem %s2714_s0, %s1709_s22  ;;  %v539_v15 = vsub.s32 0, %v538_v13  ;;  %v543_v17 = vsub.s32 1, %v538_v13  ;;  %1760 = vmatprep.mubr.msk.bf16.mxu0 %vm2215_vm1, %v2214_v14  ;;  %s2217_s29 = smov 64   ;;  %v636_v41 = vld [vmem:[#allocation2] sm:$0xff]  ;;  %v637_v43 = vld [vmem:[#allocation2 + $0x8] sm:$0xff]  ;;  %vm1146_vm3 = vcmask 261120  }
  0x91   : > { %594 = vmatpush1.bf16.msra.mxu1 %v1954_v4  ;;  %v2504_v9 = vld [vmem:[%s522_s26] sm:$0xff]  ;;  %v2506_v10 = vld [vmem:[%s522_s26 + $0x8] sm:$0xff]  ;;  %s2218_s21 = smov 32   ;;  %s2219_s22 = smov 48   ;;  %vm1149_vm4 = vcmask 392192  }
  0x92   : > { %595 = vmatprep.subr.bf16.mxu1 %v1955_v5  ;;  %v526_v11 = vpack.c.bf16 %v2506_v10, %v2504_v9  ;;  %v540_v18 = vrot.slane %v535_v16, %v539_v15  ;;  %v544_v20 = vrot.slane %v535_v16, %v543_v17  ;;  %s2220_s27 = smov 16   ;;  %s2221_s16 = smov 96  }
  0x93   : > { %s2222_s20 = smov 80   ;;  %s515_s18 = sand.u32 1, %s2195_s30  }
  0x94   : > { %s1659_s13 = sshll.u32 %s515_s18, 4  ;;  %s2770_s24 = sld [smem:[#allocation24_spill]] }
  0x95   : > { %596 = vmatpush1.bf16.msra.mxu1 %v1957_v6  ;;  %s2223_s25 = smov [#allocation10]  }
  0x96   : > { %597 = vmatprep.subr.bf16.mxu1 %v1958_v7 }
  0x99   : > { %598 = vmatpush1.bf16.msra.mxu1 %v1960_v8 }
  0x9a   : > { %1746 = vmatprep.subr.bf16.mxu1 %v2214_v14 }
  0x9c   : > { %1670 = vmatmul.mubr.msk.bf16.vlgmr.msra.gmra.mrb[0].mxu1 %vm587_vm0, %v526_v11 }
  0x9d   : > { %1748 = vmatprep.mubr.msk.bf16.mxu1 %vm2215_vm1, %v2214_v14 }
 0x16f   : > { %v625_v19 = vpop.f32.mrb[0].mxu1 }
 0x170   : > { %v627_v21 = vpop.f32.mrb[1].mxu1  ;;  %v626_v23 = vadd.f32 %v625_v19, %v540_v18 }
 0x171   : > { %v629_v22 = vpop.f32.mrb[2].mxu1  ;;  %v628_v26 = vadd.f32 %v627_v21, %v544_v20 }
 0x172   : > { %v630_v24 = vadd.f32 %v629_v22, %v540_v18  ;;  %v631_v25 = vpop.f32.mrb[3].mxu1 }
 0x173   : > { %v632_v27 = vadd.f32 %v631_v25, %v544_v20 }
 0x174   : > { %v634_v28 = vpack.c.bf16 %v630_v24, %v626_v23 }
 0x175   : > { %v2520_v29 = vpack.c.bf16 %v632_v27, %v628_v26 }
 0x176   : > { %756 = vrot.lane.b32.xlu1 %v634_v28, %s2216_s23  ;;  %639 = vrot.lane.b32.xlu0 %v634_v28, %s2217_s29 }
 0x17a   : > { %880 = vrot.lane.b32.xlu1 %v634_v28, %s2218_s21  ;;  %758 = vrot.lane.b32.xlu0 %v634_v28, %s2219_s22 }
 0x17e   : > { %1001 = vrot.lane.b32.xlu1 %v634_v28, %s2220_s27  ;;  %878 = vrot.lane.b32.xlu0 %v634_v28, %s2221_s16 }
 0x182   : > { %999 = vrot.lane.b32.xlu0 %v634_v28, %s2222_s20 }
 0x1e8   : > { %v640_v30 = vpop.permute.xlu0 %639  ;;  %v757_v32 = vpop.permute.xlu1 %756 }
 0x1e9   : > { %v646_v31 = vsel %vm641_vm2, %v640_v30, 0 }
 0x1ea   : > { %1747 = vmatpush3.bf16.xpose.msra.mxu1 %v646_v31 }
 0x1eb   : > { %1752 = vmatprep.subr.bf16.mxu1 %v2214_v14 }
 0x1ec   : > { %v759_v33 = vpop.permute.xlu0 %758  ;;  %v881_v35 = vpop.permute.xlu1 %880 }
 0x1ed   : > { %v764_v34 = vsel %vm641_vm2, %v759_v33, 0  ;;  %v886_v36 = vsel %vm641_vm2, %v881_v35, 0 }
 0x1ee   : > { %1759 = vmatpush3.bf16.xpose.msra.mxu0 %v764_v34 }
 0x1ef   : > { %1770 = vmatprep.subr.bf16.mxu0 %v2214_v14 }
 0x1f0   : > { %v1002_v37 = vpop.permute.xlu1 %1001  ;;  %v879_v38 = vpop.permute.xlu0 %878 }
 0x1f1   : > { %1749 = vmatmul.mubr.msk.bf16.vlgmr.msra.gmra.mrb[4].mxu1 %vm641_vm2, %v634_v28  ;;  %v1007_v39 = vsel %vm641_vm2, %v1002_v37, 0 }
 0x1f2   : > { %1753 = vmatpush3.bf16.msra.mxu1 %v2520_v29  ;;  %1754 = vmatprep.mubr.msk.bf16.mxu1 %vm2215_vm1, %v2214_v14 }
 0x1f3   : > { %1764 = vmatprep.subr.bf16.mxu1 %v2214_v14 }
 0x1f4   : > { %v1000_v40 = vpop.permute.xlu0 %999 }
 0x1f5   : > { %1761 = vmatmul.mubr.msk.bf16.vlgmr.msra.gmra.mrb[0].mxu0 %vm641_vm2, %v757_v32 }
 0x1f6   : > { %1771 = vmatpush3.bf16.xpose.msra.mxu0 %v886_v36  ;;  %1772 = vmatprep.mubr.msk.bf16.mxu0 %vm2215_vm1, %v2214_v14 }
 0x1f7   : > { %1782 = vmatprep.subr.bf16.mxu0 %v2214_v14 }
 0x1fd   : > { %1773 = vmatmul.mubr.msk.bf16.vlgmr.msra.gmra.mrb[4].mxu0 %vm641_vm2, %v879_v38 }
 0x1fe   : > { %1783 = vmatpush3.bf16.xpose.msra.mxu0 %v1007_v39  ;;  %1784 = vmatprep.mubr.msk.bf16.mxu0 %vm2215_vm1, %v2214_v14 }
 0x1ff   : > { %1794 = vmatprep.subr.bf16.mxu0 %v2214_v14 }
 0x205   : > { %1785 = vmatmul.mubr.msk.bf16.vlgmr.msra.gmra.mrb[8].mxu0 %vm641_vm2, %v1000_v40 }
 0x206   : > { %1802 = vmatprep.mubr.msk.bf16.mxu0 %vm2215_vm1, %v2214_v14 }
 0x2c4   : > { %v682_v42 = vpop.f32.mrb[4].mxu1 }
 0x2c5   : > { %v683_v44 = vadd.f32 %v682_v42, %v636_v41  ;;  %v1750_v45 = vpop.f32.mrb[5].mxu1 }
 0x2c6   : > { %v685_v46 = vpop.f32.mrb[6].mxu1 }
 0x2c7   : > { %v686_v47 = vadd.f32 %v685_v46, %v637_v43  ;;  %v1751_v48 = vpop.f32.mrb[7].mxu1  ;;  %v689_v49 = vsel %vm641_vm2, %v683_v44, -inf }
 0x2c8   : > { %690 = vmax.xlane.f32.xlu1 %v689_v49  ;;  %v800_v50 = vpop.f32.mrb[0].mxu0 }
 0x2c9   : > { %v801_v51 = vadd.f32 %v800_v50, %v636_v41  ;;  %v1762_v52 = vpop.f32.mrb[1].mxu0  ;;  %v692_v53 = vsel %vm641_vm2, %v686_v47, -inf }
 0x2ca   : > { %693 = vmax.xlane.f32.xlu0 %v692_v53  ;;  %v803_v54 = vpop.f32.mrb[2].mxu0 }
 0x2cb   : > { %v804_v55 = vadd.f32 %v803_v54, %v637_v43  ;;  %v1763_v56 = vpop.f32.mrb[3].mxu0  ;;  %v807_v57 = vsel %vm641_vm2, %v801_v51, -inf }
 0x2cd   : > { %v810_v58 = vsel %vm641_vm2, %v804_v55, -inf }
 0x2ce   : > { %808 = vmax.xlane.f32.xlu0 %v807_v57  ;;  %811 = vmax.xlane.f32.xlu1 %v810_v58 }
 0x2d0   : > { %v922_v59 = vpop.f32.mrb[4].mxu0 }
 0x2d1   : > { %v923_v60 = vadd.f32 %v922_v59, %v636_v41  ;;  %v1774_v61 = vpop.f32.mrb[5].mxu0 }
 0x2d2   : > { %v925_v62 = vpop.f32.mrb[6].mxu0 }
 0x2d3   : > { %v926_v63 = vadd.f32 %v925_v62, %v637_v43  ;;  %v1775_v0 = vpop.f32.mrb[7].mxu0  ;;  %v929_v1 = vsel %vm641_vm2, %v923_v60, -inf }
 0x2d4   : > { %930 = vmax.xlane.f32.xlu0 %v929_v1 }
 0x2d5   : > { %v932_v2 = vsel %vm641_vm2, %v926_v63, -inf }
 0x2d6   : > { %933 = vmax.xlane.f32.xlu1 %v932_v2 }
 0x2d8   : > { %v1043_v3 = vpop.f32.mrb[8].mxu0 }
 0x2d9   : > { %v1044_v4 = vadd.f32 %v1043_v3, %v636_v41  ;;  %v1786_v5 = vpop.f32.mrb[9].mxu0 }
 0x2da   : > { %v1046_v6 = vpop.f32.mrb[10].mxu0 }
 0x2db   : > { %v1047_v7 = vadd.f32 %v1046_v6, %v637_v43  ;;  %v1787_v8 = vpop.f32.mrb[11].mxu0  ;;  %v1050_v11 = vsel %vm641_vm2, %v1044_v4, -inf }
 0x2dc   : > { %1051 = vmax.xlane.f32.xlu0 %v1050_v11 }
 0x2dd   : > { %v1053_v12 = vsel %vm641_vm2, %v1047_v7, -inf }
 0x2de   : > { %1054 = vmax.xlane.f32.xlu1 %v1053_v12 }
 0x355   : > { %v691_v13 = vpop.xlane.xlu1 %690 }
 0x356   : > { %v695_v15 = vsub.f32 %v683_v44, %v691_v13 }
 0x357   : > { %v694_v16 = vpop.xlane.xlu0 %693 }
 0x358   : > { %v697_v17 = vmul.f32 1.442695, %v695_v15  ;;  %v696_v18 = vsub.f32 %v686_v47, %v694_v16 }
 0x35a   : > { %1977 = vpow2.f32 %v697_v17  ;;  %v699_v19 = vmul.f32 1.442695, %v696_v18 }
 0x35b   : > { %v812_v20 = vpop.xlane.xlu1 %811  ;;  %v809_v21 = vpop.xlane.xlu0 %808 }
 0x35c   : > { %1979 = vpow2.f32 %v699_v19  ;;  %v814_v22 = vsub.f32 %v804_v55, %v812_v20  ;;  %v813_v23 = vsub.f32 %v801_v51, %v809_v21 }
 0x35e   : > { %v817_v24 = vmul.f32 1.442695, %v814_v22  ;;  %v815_v25 = vmul.f32 1.442695, %v813_v23 }
 0x360   : > { %1981 = vpow2.f32 %v817_v24 }
 0x361   : > { %1983 = vpow2.f32 %v815_v25  ;;  %v931_v26 = vpop.xlane.xlu0 %930 }
 0x362   : > { %v935_v27 = vsub.f32 %v923_v60, %v931_v26 }
 0x363   : > { %v934_v28 = vpop.xlane.xlu1 %933 }
 0x364   : > { %v1978_v30 = vpop.eup %1977  ;;  %v937_v31 = vmul.f32 1.442695, %v935_v27  ;;  %v936_v32 = vsub.f32 %v926_v63, %v934_v28 }
 0x365   : > { %v701_v33 = vsel %vm641_vm2, %v1978_v30, 0.0 }
 0x366   : > { %v1980_v34 = vpop.eup %1979  ;;  %1985 = vpow2.f32 %v937_v31  ;;  %v939_v35 = vmul.f32 1.442695, %v936_v32  ;;  %702 = vadd.xlane.f32.xlu0 %v701_v33  ;;  %v1961_v32 = vld [vmem:[#allocation5] sm:$0xff]  }
 0x367   : > { %v704_v36 = vsel %vm641_vm2, %v1980_v34, 0.0  ;;  %1795 = vmatpush3.bf16.msra.mxu0 %v1961_v32 }
 0x368   : > { %1987 = vpow2.f32 %v939_v35  ;;  %705 = vadd.xlane.f32.xlu1 %v704_v36  ;;  %v1962_v35 = vld [vmem:[#allocation5 + $0x8] sm:$0xff]   ;;  %1796 = vmatprep.subr.bf16.mxu0 %v2214_v14 }
 0x369   : > { %v1052_v37 = vpop.xlane.xlu0 %1051 }
 0x36a   : > { %v1982_v38 = vpop.eup %1981  ;;  %v1056_v39 = vsub.f32 %v1044_v4, %v1052_v37  ;;  %v1963_v37 = vld [vmem:[#allocation5 + $0x10] sm:$0xff]  }
 0x36b   : > { %v1984_v40 = vpop.eup %1983  ;;  %v822_v41 = vsel %vm641_vm2, %v1982_v38, 0.0  ;;  %v1055_v50 = vpop.xlane.xlu1 %1054  ;;  %1797 = vmatpush3.bf16.msra.mxu0 %v1962_v35 }
 0x36c   : > { %v1058_v42 = vmul.f32 1.442695, %v1056_v39  ;;  %823 = vadd.xlane.f32.xlu1 %v822_v41  ;;  %v819_v43 = vsel %vm641_vm2, %v1984_v40, 0.0  ;;  %v1057_v51 = vsub.f32 %v1047_v7, %v1055_v50  ;;  %1798 = vmatprep.subr.bf16.mxu0 %v2214_v14 }
 0x36d   : > { %820 = vadd.xlane.f32.xlu0 %v819_v43 }
 0x36e   : > { %1989 = vpow2.f32 %v1058_v42  ;;  %v1060_v52 = vmul.f32 1.442695, %v1057_v51  ;;  %v1964_v42 = vld [vmem:[#allocation5 + $0x18] sm:$0xff]  }
 0x36f   : > { %1799 = vmatpush3.bf16.msra.mxu0 %v1963_v37 }
 0x370   : > { %v1986_v44 = vpop.eup %1985  ;;  %1991 = vpow2.f32 %v1060_v52  ;;  %1800 = vmatprep.subr.bf16.mxu0 %v2214_v14 }
 0x371   : > { %v941_v45 = vsel %vm641_vm2, %v1986_v44, 0.0 }
 0x372   : > { %v1988_v46 = vpop.eup %1987  ;;  %942 = vadd.xlane.f32.xlu0 %v941_v45 }
 0x373   : > { %v944_v47 = vsel %vm641_vm2, %v1988_v46, 0.0  ;;  %1801 = vmatpush3.bf16.msra.mxu0 %v1964_v42 }
 0x374   : > { %945 = vadd.xlane.f32.xlu1 %v944_v47  ;;  %1818 = vmatprep.subr.bf16.mxu0 %v2214_v14 }
 0x378   : > { %v1990_v48 = vpop.eup %1989 }
 0x379   : > { %v1062_v49 = vsel %vm641_vm2, %v1990_v48, 0.0 }
 0x37a   : > { %1063 = vadd.xlane.f32.xlu0 %v1062_v49  ;;  %v1992_v53 = vpop.eup %1991 }
 0x37b   : > { %v1065_v54 = vsel %vm641_vm2, %v1992_v53, 0.0 }
 0x385   : > { %952 = vrot.lane.b32.xlu1 %v2520_v29, %s2221_s16  ;;  %s1710_s16 = sshll.u32 %s2322_s17, 8  ;;  %s2673_s17 = scalar_lea.sflag [#allocation4], %s515_s18 }
 0x386   : > { %s2667_s28 = scalar_lea.hbm %s2770_s24, %s1710_s16 }
 0x390   : > { %831 = vrot.lane.b32.xlu0 %v2520_v29, %s2216_s23 }
 0x3a9   : > { %1066 = vadd.xlane.f32.xlu1 %v1065_v54 }
 0x3ba   : > { %1073 = vrot.lane.b32.xlu1 %v2520_v29, %s2222_s20  ;;  %s517_s20 = scalar_lea.vmem [#allocation10], %s1659_s13  ;;  %s2133_s13 = sshll.u32 %s2223_s25, 4  ;;  %s2134_s13 = int_to_ptr.vmem [resolvable:$false] %s2133_s13 }
 0x3bb   : > { %s1544_s15 = sshll.u32 %s517_s20, 4  ;;  %s2135_s19 = scalar_lea.vmem %s2134_s13, 512  ;;  %s2669_s15 = int_to_ptr.vmem [resolvable:$true] %s1544_s15 }
 0x3bc   : > { %s2129_s26 = scalar_lea.vmem %s2669_s15, 256  ;;  %p2136_p8 = scmp.lt.s32.totalorder %s2669_s15, %s2134_s13 }
 0x3bd   : > { %p2130_p2 = scmp.ne.s32.totalorder %s2669_s15, %s2129_s26  ;;  %p2137_p11 = scmp.lt.s32.totalorder %s2135_s19, %s2129_s26 }
 0x3bf   : > { %p2138_p5 = por %p2137_p11, %p2136_p8 }
 0x3f3   : > { %v703_v55 = vpop.xlane.xlu0 %702 }
 0x3f4   : > { %1993 = vrcp.f32 %v703_v55 }
 0x3f5   : > { %v706_v56 = vpop.xlane.xlu1 %705 }
 0x3f6   : > { %1995 = vrcp.f32 %v706_v56 }
 0x3f9   : > { %v824_v57 = vpop.xlane.xlu1 %823 }
 0x3fa   : > { %v821_v58 = vpop.xlane.xlu0 %820  ;;  %1997 = vrcp.f32 %v824_v57 }
 0x3fb   : > { %1999 = vrcp.f32 %v821_v58 }
 0x3fe   : > { %v1994_v59 = vpop.eup %1993 }
 0x3ff   : > { %v709_v61 = vmul.f32 %v1994_v59, %v1978_v30  ;;  %v943_v0 = vpop.xlane.xlu0 %942 }
 0x400   : > { %v1996_v60 = vpop.eup %1995 }
 0x401   : > { %v710_v62 = vmul.f32 %v1996_v60, %v1980_v34  ;;  %v946_v63 = vpop.xlane.xlu1 %945 }
 0x402   : > { %2001 = vrcp.f32 %v946_v63 }
 0x403   : > { %v711_v1 = vpack.c.bf16 %v710_v62, %v709_v61  ;;  %2003 = vrcp.f32 %v943_v0  ;;  %v1679_v0 = vld [vmem:[%s2719_s5] ss:$0 sm:$0xff] }
 0x404   : > { %v1998_v2 = vpop.eup %1997 }
 0x405   : > { %1755 = vmatmul.mubr.msk.bf16.vlgmr.msra.gmra.mrb[8].mxu1 %vm641_vm2, %v711_v1  ;;  %v2000_v29 = vpop.eup %1999  ;;  %v828_v4 = vmul.f32 %v1998_v2, %v1982_v38  ;;  %v953_v11 = vpop.permute.xlu1 %952 }
 0x406   : > { %1766 = vmatprep.mubr.msk.bf16.mxu1 %vm2215_vm1, %v2214_v14  ;;  %v827_v5 = vmul.f32 %v2000_v29, %v1984_v40 }
 0x407   : > { %v1064_v3 = vpop.xlane.xlu0 %1063 }
 0x408   : > { %v829_v7 = vpack.c.bf16 %v828_v4, %v827_v5  ;;  %2005 = vrcp.f32 %v1064_v3 }
 0x40b   : > { %v832_v6 = vpop.permute.xlu0 %831 }
 0x40c   : > { %1765 = vmatpush3.bf16.msra.mxu1 %v832_v6  ;;  %v2002_v8 = vpop.eup %2001 }
 0x40d   : > { %1776 = vmatprep.subr.bf16.mxu1 %v2214_v14  ;;  %v2004_v12 = vpop.eup %2003  ;;  %v950_v13 = vmul.f32 %v2002_v8, %v1988_v46 }
 0x40e   : > { %v949_v15 = vmul.f32 %v2004_v12, %v1986_v44 }
 0x40f   : > { %1767 = vmatmul.mubr.msk.bf16.vlgmr.msra.gmra.mrb[12].mxu1 %vm641_vm2, %v829_v7 }
 0x410   : > { %1777 = vmatpush3.bf16.msra.mxu1 %v953_v11  ;;  %1778 = vmatprep.mubr.msk.bf16.mxu1 %vm2215_vm1, %v2214_v14  ;;  %v951_v16 = vpack.c.bf16 %v950_v13, %v949_v15 }
 0x411   : > { %1788 = vmatprep.subr.bf16.mxu1 %v2214_v14 }
 0x412   : > { %v2006_v19 = vpop.eup %2005 }
 0x413   : > { %v1070_v21 = vmul.f32 %v2006_v19, %v1990_v48 }
 0x417   : > { %1779 = vmatmul.mubr.msk.bf16.vlgmr.msra.gmra.mrb[16].mxu1 %vm641_vm2, %v951_v16 }
 0x418   : > { %1790 = vmatprep.mubr.msk.bf16.mxu1 %vm2215_vm1, %v2214_v14 }
 0x436   : > { %v1067_v17 = vpop.xlane.xlu1 %1066 }
 0x437   : > { %2007 = vrcp.f32 %v1067_v17 }
 0x43a   : > { %v1074_v18 = vpop.permute.xlu1 %1073 }
 0x43b   : > { %1789 = vmatpush3.bf16.msra.mxu1 %v1074_v18 }
 0x43c   : > { %1806 = vmatprep.subr.bf16.mxu1 %v2214_v14 }
 0x441   : > { %v2008_v20 = vpop.eup %2007 }
 0x442   : > { %v1071_v22 = vmul.f32 %v2008_v20, %v1992_v53 }
 0x444   : > { %v1072_v23 = vpack.c.bf16 %v1071_v22, %v1070_v21  ;;  %v1965_v22 = vld [vmem:[#allocation7] sm:$0xff]  }
 0x446   : > { %1791 = vmatmul.mubr.msk.bf16.vlgmr.msra.gmra.mrb[20].mxu1 %vm641_vm2, %v1072_v23  ;;  %v1967_v23 = vld [vmem:[#allocation7 + $0x10] sm:$0xff]  }
 0x447   : > { %1814 = vmatprep.mubr.msk.bf16.mxu1 %vm2215_vm1, %v2214_v14  ;;  %1807 = vmatpush3.bf16.msra.mxu1 %v1965_v22 }
 0x448   : > { %1808 = vmatprep.subr.bf16.mxu1 %v2214_v14 }
 0x4d8   : > { %v749_v24 = vpop.f32.mrb[8].mxu1 }
 0x4d9   : > { %v1756_v25 = vpop.f32.mrb[9].mxu1 }
 0x4da   : > { %v752_v26 = vpop.f32.mrb[10].mxu1  ;;  %v1969_v25 = vld [vmem:[%s2724_s10] sm:$0xff]  }
 0x4db   : > { %v1757_v27 = vpop.f32.mrb[11].mxu1 }
 0x4dc   : > { %v1971_v27 = vld [vmem:[%s2724_s10 + $0x10] sm:$0xff]  }
 0x4e2   : > { %v871_v28 = vpop.f32.mrb[12].mxu1 }
 0x4e3   : > { %v1768_v30 = vpop.f32.mrb[13].mxu1 }
 0x4e4   : > { %v874_v31 = vpop.f32.mrb[14].mxu1  ;;  %v1973_v30 = vld [vmem:[%s2724_s10 + $0x20] sm:$0xff]  }
 0x4e5   : > { %v1934_v33 = vpack.i.bf16 %v874_v31, %v871_v28  ;;  %v1769_v34 = vpop.f32.mrb[15].mxu1  ;;  %v1972_v28 = vld [vmem:[%s2724_s10 + $0x18] sm:$0xff]   ;;  %v1974_v31 = vld [vmem:[%s2724_s10 + $0x28] sm:$0xff]  }
 0x4e7   : > { %1935 = vrot.lane.b32.xlu0 %v1934_v33, %s2220_s27  ;;  %s2769_s27 = sld [smem:[#allocation20_spill]] }
 0x4ea   : > { %v992_v36 = vpop.f32.mrb[16].mxu1 }
 0x4eb   : > { %v1780_v38 = vpop.f32.mrb[17].mxu1 }
 0x4ec   : > { %v995_v39 = vpop.f32.mrb[18].mxu1 }
 0x4ed   : > { %v1939_v40 = vpack.i.bf16 %v995_v39, %v992_v36  ;;  %v1781_v41 = vpop.f32.mrb[19].mxu1  ;;  %v1685_v39 = vld [vmem:[%s2720_s6] ss:$0 sm:$0xff]  ;;  %p2771_p3 = scmp.ne.s32.totalorder %s2769_s27, 0 }
 0x4ef   : > { %1940 = vrot.lane.b32.xlu1 %v1939_v40, %s2218_s21  ;;  %p2131_p4 = pnand %p2130_p2, %p2771_p3 }
 0x4f1   : > { %p2132_p7 = pneg %p2131_p4 }
 0x4f3   : > { %p2139_p0 = pnand %p2138_p5, %p2132_p7 }
 0x519   : > { %v1113_v43 = vpop.f32.mrb[20].mxu1 }
 0x51a   : > { %v1792_v44 = vpop.f32.mrb[21].mxu1 }
 0x51b   : > { %v1116_v45 = vpop.f32.mrb[22].mxu1  ;;  %v1686_v44 = vld [vmem:[%s2721_s7] ss:$0 sm:$0xff] }
 0x51c   : > { %v1944_v46 = vpack.i.bf16 %v1116_v45, %v1113_v43  ;;  %v1793_v47 = vpop.f32.mrb[23].mxu1 }
 0x51e   : > { %1945 = vrot.lane.b32.xlu0 %v1944_v46, %s2219_s22  ;;  %s2768_s22 = sld [smem:[#allocation23_spill]] }
 0x559   : > { %v1936_v48 = vpop.permute.xlu0 %1935 }
 0x55a   : > { %v1938_v50 = vunpack.i.h.bf16 %v1936_v48  ;;  %v1937_v51 = vunpack.i.l.bf16 %v1936_v48 }
 0x55c   : > { %v1145_v55 = vsel %vm641_vm2, %v752_v26, %v1938_v50  ;;  %v1144_v56 = vsel %vm641_vm2, %v749_v24, %v1937_v51  ;;  %v1968_v24 = vld [vmem:[#allocation7 + $0x18] sm:$0xff]   ;;  %v1976_v50 = vld [vmem:[%s2724_s10 + $0x38] sm:$0xff]   ;;  %v1687_v51 = vld [vmem:[#allocation8] ss:$0 sm:$0xff] }
 0x55d   : > { %v1970_v26 = vld [vmem:[%s2724_s10 + $0x8] sm:$0xff]  }
 0x561   : > { %v1941_v49 = vpop.permute.xlu1 %1940 }
 0x562   : > { %v1943_v52 = vunpack.i.h.bf16 %v1941_v49  ;;  %v1942_v53 = vunpack.i.l.bf16 %v1941_v49  ;;  %v1975_v49 = vld [vmem:[%s2724_s10 + $0x30] sm:$0xff]  }
 0x564   : > { %v1148_v59 = vsel %vm1146_vm3, %v1145_v55, %v1943_v52  ;;  %v1147_v60 = vsel %vm1146_vm3, %v1144_v56, %v1942_v53 }
 0x590   : > { %v1946_v54 = vpop.permute.xlu0 %1945 }
 0x591   : > { %v1948_v57 = vunpack.i.h.bf16 %v1946_v54  ;;  %v1947_v58 = vunpack.i.l.bf16 %v1946_v54 }
 0x593   : > { %v1151_v61 = vsel %vm1149_vm4, %v1148_v59, %v1948_v57  ;;  %v1150_v62 = vsel %vm1149_vm4, %v1147_v60, %v1947_v58 }
 0x594   : > { %v1152_v63 = vpack.c.bf16 %v1151_v61, %v1150_v62 }
 0x596   : > { %1803 = vmatmul.mubr.msk.bf16.vlgmr.msra.gmra.mrb[12].mxu0 %vm587_vm0, %v1152_v63 }
 0x597   : > { %1834 = vmatprep.mubr.msk.bf16.mxu0 %vm2215_vm1, %v2214_v14  ;;  %1819 = vmatpush3.bf16.msra.mxu0 %v1969_v25 }
 0x598   : > { %1820 = vmatprep.subr.bf16.mxu0 %v2214_v14 }
 0x59b   : > { %1821 = vmatpush3.bf16.msra.mxu0 %v1970_v26 }
 0x59c   : > { %1822 = vmatprep.subr.bf16.mxu0 %v2214_v14 }
 0x59f   : > { %1823 = vmatpush3.bf16.msra.mxu0 %v1971_v27  ;;  %v1703_v27 = vld [vmem:[%s2768_s22] ss:$0 sm:$0xff] }
 0x5a0   : > { %1824 = vmatprep.subr.bf16.mxu0 %v2214_v14 }
 0x5a3   : > { %1825 = vmatpush3.bf16.msra.mxu0 %v1972_v28 }
 0x5a4   : > { %1826 = vmatprep.subr.bf16.mxu0 %v2214_v14 }
 0x5a7   : > { %1827 = vmatpush3.bf16.msra.mxu0 %v1973_v30 }
 0x5a8   : > { %1828 = vmatprep.subr.bf16.mxu0 %v2214_v14 }
 0x5ab   : > { %1829 = vmatpush3.bf16.msra.mxu0 %v1974_v31 }
 0x5ac   : > { %1830 = vmatprep.subr.bf16.mxu0 %v2214_v14 }
 0x5af   : > { %1831 = vmatpush3.bf16.msra.mxu0 %v1975_v49 }
 0x5b0   : > { %1832 = vmatprep.subr.bf16.mxu0 %v2214_v14 }
 0x5b3   : > { %1833 = vmatpush3.bf16.msra.mxu0 %v1976_v50 }
 0x669   : > { %v1229_v1 = vpop.f32.mrb[12].mxu0 }
 0x66a   : > { %v1230_v2 = vadd.f32 %v1679_v0, %v1229_v1  ;;  %v1804_v29 = vpop.f32.mrb[13].mxu0 }
 0x66b   : > { %v1232_v3 = vpop.f32.mrb[14].mxu0 }
 0x66c   : > { %v1233_v4 = vadd.f32 %v1679_v0, %v1232_v3  ;;  %v1805_v5 = vpop.f32.mrb[15].mxu0  ;;  %v1236_v6 = vadd.f32 %v1230_v2, %v2504_v9 }
 0x66e   : > { %v1238_v7 = vsel %vm587_vm0, %v1236_v6, 0.0  ;;  %v1237_v8 = vadd.f32 %v1233_v4, %v2506_v10  ;;  %v1966_v10 = vld [vmem:[#allocation7 + $0x8] sm:$0xff]  }
 0x66f   : > { %1239 = vadd.xlane.f32.xlu1 %v1238_v7  ;;  %1809 = vmatpush3.bf16.msra.mxu1 %v1966_v10 }
 0x670   : > { %v1241_v11 = vsel %vm587_vm0, %v1237_v8, 0.0  ;;  %1810 = vmatprep.subr.bf16.mxu1 %v2214_v14 }
 0x671   : > { %1242 = vadd.xlane.f32.xlu0 %v1241_v11 }
 0x673   : > { %1811 = vmatpush3.bf16.msra.mxu1 %v1967_v23 }
 0x674   : > { %1812 = vmatprep.subr.bf16.mxu1 %v2214_v14  ;;  %v1693_v14 = vld [vmem:[%s2725_s11] ss:$0 sm:$0xff] }
 0x677   : > { %1813 = vmatpush3.bf16.msra.mxu1 %v1968_v24  ;;  %v1702_v24 = vld [vmem:[%s2726_s12] ss:$0 sm:$0xff] }
 0x6fc   : > { %v1240_v12 = vpop.xlane.xlu1 %1239 }
 0x6fd   : > { %v1245_v13 = vmul.f32 0.015625, %v1240_v12 }
 0x6fe   : > { %v1243_v15 = vpop.xlane.xlu0 %1242 }
 0x6ff   : > { %v1247_v16 = vsub.f32 %v1236_v6, %v1245_v13  ;;  %v1246_v17 = vmul.f32 0.015625, %v1243_v15 }
 0x701   : > { %v1248_v18 = vsub.f32 %v1237_v8, %v1246_v17  ;;  %v1249_v19 = vmul.f32 %v1247_v16, %v1247_v16 }
 0x703   : > { %v1251_v20 = vsel %vm587_vm0, %v1249_v19, 0.0  ;;  %v1250_v21 = vmul.f32 %v1248_v18, %v1248_v18 }
 0x704   : > { %1252 = vadd.xlane.f32.xlu0 %v1251_v20 }
 0x705   : > { %v1254_v9 = vsel %vm587_vm0, %v1250_v21, 0.0 }
 0x706   : > { %1255 = vadd.xlane.f32.xlu1 %v1254_v9 }
 0x791   : > { %v1253_v32 = vpop.xlane.xlu0 %1252 }
 0x792   : > { %v1257_v33 = vmul.f32 0.015625, %v1253_v32 }
 0x793   : > { %v1256_v34 = vpop.xlane.xlu1 %1255 }
 0x794   : > { %v1260_v35 = vadd.f32 1e-05, %v1257_v33  ;;  %v1258_v36 = vmul.f32 0.015625, %v1256_v34 }
 0x796   : > { %2009 = vrsqrt.f32 %v1260_v35  ;;  %v1261_v37 = vadd.f32 1e-05, %v1258_v36 }
 0x798   : > { %2011 = vrsqrt.f32 %v1261_v37 }
 0x7a0   : > { %v2010_v38 = vpop.eup %2009 }
 0x7a1   : > { %v1264_v40 = vmul.f32 %v2010_v38, %v1247_v16 }
 0x7a2   : > { %v2012_v41 = vpop.eup %2011 }
 0x7a3   : > { %v1272_v42 = vmul.f32 %v1685_v39, %v1264_v40  ;;  %v1265_v43 = vmul.f32 %v2012_v41, %v1248_v18 }
 0x7a5   : > { %v1273_v45 = vmul.f32 %v1685_v39, %v1265_v43  ;;  %v1281_v46 = vadd.f32 %v1686_v44, %v1272_v42 }
 0x7a7   : > { %v1282_v47 = vadd.f32 %v1686_v44, %v1273_v45 }
 0x7a9   : > { %v1283_v48 = vpack.c.bf16 %v1282_v47, %v1281_v46 }
 0x7ab   : > { %1815 = vmatmul.mubr.msk.bf16.vlgmr.msra.gmra.mrb[24].mxu1 %vm587_vm0, %v1283_v48 }
 0x87e   : > { %v1360_v52 = vpop.f32.mrb[24].mxu1 }
 0x87f   : > { %v1361_v53 = vadd.f32 %v1687_v51, %v1360_v52  ;;  %v1816_v54 = vpop.f32.mrb[25].mxu1 }
 0x880   : > { %v1363_v55 = vpop.f32.mrb[26].mxu1 }
 0x881   : > { %v1364_v56 = vadd.f32 %v1687_v51, %v1363_v55  ;;  %v1817_v57 = vpop.f32.mrb[27].mxu1  ;;  %v1367_v58 = vmax.f32 %v1361_v53, 0.0 }
 0x883   : > { %v1368_v59 = vmax.f32 %v1364_v56, 0.0 }
 0x885   : > { %v1369_v60 = vpack.c.bf16 %v1368_v59, %v1367_v58 }
 0x887   : > { %1835 = vmatmul.mubr.bf16.vlgmr.msra.gmra.mrb[16].mxu0 %v1369_v60 }
 0x95a   : > { %v1475_v61 = vpop.f32.mrb[16].mxu0 }
 0x95b   : > { %v1476_v62 = vadd.f32 %v1693_v14, %v1475_v61  ;;  %v1836_v63 = vpop.f32.mrb[17].mxu0 }
 0x95c   : > { %v1478_v0 = vpop.f32.mrb[18].mxu0 }
 0x95d   : > { %v1479_v1 = vadd.f32 %v1693_v14, %v1478_v0  ;;  %v1837_v2 = vpop.f32.mrb[19].mxu0  ;;  %v1482_v29 = vadd.f32 %v1476_v62, %v1281_v46 }
 0x95f   : > { %v1484_v3 = vsel %vm587_vm0, %v1482_v29, 0.0  ;;  %v1483_v4 = vadd.f32 %v1479_v1, %v1282_v47 }
 0x960   : > { %1485 = vadd.xlane.f32.xlu0 %v1484_v3 }
 0x961   : > { %v1487_v5 = vsel %vm587_vm0, %v1483_v4, 0.0 }
 0x962   : > { %1488 = vadd.xlane.f32.xlu1 %v1487_v5 }
 0x9ed   : > { %v1486_v6 = vpop.xlane.xlu0 %1485 }
 0x9ee   : > { %v1490_v7 = vmul.f32 0.015625, %v1486_v6 }
 0x9ef   : > { %v1489_v8 = vpop.xlane.xlu1 %1488 }
 0x9f0   : > { %v1492_v11 = vsub.f32 %v1482_v29, %v1490_v7  ;;  %v1491_v12 = vmul.f32 0.015625, %v1489_v8 }
 0x9f2   : > { %v1493_v13 = vsub.f32 %v1483_v4, %v1491_v12  ;;  %v1494_v15 = vmul.f32 %v1492_v11, %v1492_v11 }
 0x9f4   : > { %v1496_v16 = vsel %vm587_vm0, %v1494_v15, 0.0  ;;  %v1495_v17 = vmul.f32 %v1493_v13, %v1493_v13 }
 0x9f5   : > { %1497 = vadd.xlane.f32.xlu0 %v1496_v16 }
 0x9f6   : > { %v1499_v18 = vsel %vm587_vm0, %v1495_v17, 0.0 }
 0x9f7   : > { %1500 = vadd.xlane.f32.xlu1 %v1499_v18 }
 0xa82   : > { %v1498_v19 = vpop.xlane.xlu0 %1497 }
 0xa83   : > { %v1502_v20 = vmul.f32 0.015625, %v1498_v19 }
 0xa84   : > { %v1501_v21 = vpop.xlane.xlu1 %1500 }
 0xa85   : > { %v1505_v9 = vadd.f32 1e-05, %v1502_v20  ;;  %v1503_v22 = vmul.f32 0.015625, %v1501_v21 }
 0xa87   : > { %2013 = vrsqrt.f32 %v1505_v9  ;;  %v1506_v10 = vadd.f32 1e-05, %v1503_v22 }
 0xa89   : > { %2015 = vrsqrt.f32 %v1506_v10 }
 0xa91   : > { %v2014_v23 = vpop.eup %2013 }
 0xa92   : > { %v1509_v25 = vmul.f32 %v2014_v23, %v1492_v11 }
 0xa93   : > { %v2016_v26 = vpop.eup %2015 }
 0xa94   : > { %v1517_v28 = vmul.f32 %v1702_v24, %v1509_v25  ;;  %v1510_v30 = vmul.f32 %v2016_v26, %v1493_v13 }
 0xa96   : > { %v1526_v31 = vadd.f32 %v1703_v27, %v1517_v28  ;;  %v1518_v32 = vmul.f32 %v1702_v24, %v1510_v30 }
 0xa98   : > { %v1527_v33 = vadd.f32 %v1703_v27, %v1518_v32  ;;  %1528 = vst.msk [vmem:[%s517_s20] sm:$0xff] %vm587_vm0, %v1526_v31 }
 0xa9a   : > { %1529 = vst.msk [vmem:[%s517_s20 + $0x8] sm:$0xff] %vm587_vm0, %v1527_v33 }
 0xa9b   : > { %2142 = shalt.err (!%p2139_p0)
}
 0xa9c   : > { %s2143_s18 = scalar_lea.hbm %s2667_s28, 256  ;;  %s2147_s21 = scalar_lea.hbm %s2770_s24, 512 }
 0xa9d   : > { %p2144_p6 = scmp.ne.s32.totalorder %s2667_s28, %s2143_s18  ;;  %p2148_p13 = scmp.lt.u32.totalorder %s2667_s28, %s2770_s24 }
 0xa9e   : > { %p2149_p12 = scmp.lt.u32.totalorder %s2147_s21, %s2143_s18  ;;  %p2151_p2 = scmp.lt.u32.totalorder %s2143_s18, %s2667_s28 }
 0xa9f   : > { %p2145_p9 = pnand %p2144_p6, %p2771_p3 }
 0xaa0   : > { %p2150_p1 = por %p2149_p12, %p2148_p13 }
 0xaa1   : > { %p2146_p10 = pneg %p2145_p9 }
 0xaa2   : > { %p2152_p4 = por %p2151_p2, %p2150_p1 }
 0xaa4   : > { %p2153_p7 = pnand %p2152_p4, %p2146_p10 }
 0xaa6   : > { %2156 = shalt.err (!%p2153_p7)
}
 0xaa7   : > { %s2224_s20 = smov 128   ;;  %s2225_s14 = smov 8  }
 0xaa8   : > { %1854 = dma.vmem_to_hbm [thread:$0]  (%p2771_p3), %s2669_s15, 256, %s2667_s28, %s2673_s17, %s2224_s20, %s2224_s20, %s2225_s14  }
 0xaa9 PF: > { %s2772_s4 = sld [smem:[#allocation17_spill]]  ;;  %s2773_s26 = sld [smem:[#allocation15_spill]] }
 0xaaa   : > { %s2774_s25 = sld [smem:[#allocation21_spill]] }
 0xaaf   : > { %p1881_p8 = scmp.ge.s32.totalorder %s2772_s4, 2  ;;  %s1559_s13 = sand.u32 1, %s2773_s26  }
 0xab0   : > { %p2775_p11 = scmp.ne.s32.totalorder %s2774_s25, 0  ;;  %s1560_s19 = scalar_lea.sflag [#allocation4], %s1559_s13 }
 0xab2   : > { %p1870_p5 = pnand %p1881_p8, %p2775_p11 }
 0xab4   : > { %2186 = dma.done.wait (!%p1870_p5), %s1560_s19, 256  }
 0xab5   : > { %2188 = vsyncadd (!%p1870_p5), %s1560_s19, 4294967040  ;;  %s2776_s16 = sld [smem:[#allocation18_spill]]  ;;  %s2777_s18 = sld [smem:[#allocation16_spill]] }
 0xab6   : > { %s2778_s15 = sld [smem:[#allocation19_spill]]  ;;  %s2779_s29 = smov %s2195_s30 }
 0xabb   : > { %p27_p0 = scmp.ge.s32.totalorder %s2776_s16, 4   ;;  %s2780_s30 = smov %s2777_s18 }
 0xabd   :  { %29 = sbr.rel (!%p27_p0) target bundleno = 10 (0xa), region = 128 }
 0xac4   :  { %1565 = vsyncpa [#allocation3], 1 }
 0xac5   :  { %1567 = vsyncpa [#allocation3 + $0x1], 1 }
 0xac6   :  { %1568 = vsyncpa [#allocation6], 1 }
 0xac7   :  { %1569 = vsyncpa [#allocation9], 1 }
 0xac8   :  { %1570 = vsyncpa [#allocation4], 1 }
 0xac9   :  { %1572 = vsyncpa [#allocation4 + $0x1], 1 }

</bundles_post_ra>
